<compile_context>
chip_gen: v7x
topology: tpu7x:2x2x1
jax: 0.10.0
libtpu: 0.0.40
codegen_flags: <defaults>
</compile_context>

<pallas_src>
import functools

import jax
import jax.numpy as jnp
from jax.experimental import pallas as pl
from jax.experimental.pallas import tpu as pltpu

LANES = 128                    # packed output slab width (lane-dense, unmasked vst)
LOGP_HI_LANE = LANES - 3       # log_prob hi half (bf16)
LOGP_LO_LANE = LANES - 2       # log_prob lo half (bf16 residual)
ACT_LANE = LANES - 1           # sampled action (small int, exact in bf16)


def _mix32(x):
    """splitmix32-style finalizer: full 32-bit avalanche, pure VPU int ops."""
    x = (x ^ (x >> 16)) * jnp.uint32(0x7FEB352D)
    x = (x ^ (x >> 15)) * jnp.uint32(0x846CA68B)
    return x ^ (x >> 16)


def actor_categorical_kernel(seed_ref, x_ref, w1_ref, b1_ref, w2_ref, b2_ref,
                             w3_ref, b3_ref, out_ref, *, n_actions, b_tile,
                             row_chunk):
    seed = seed_ref[0].astype(jnp.uint32)
    tile_row0 = pl.program_id(0) * b_tile

    # Resident (constant index_map) weights/biases -- read once per grid step.
    w1 = w1_ref[...]
    w2 = w2_ref[...]
    w3 = w3_ref[...]
    b1 = b1_ref[...]
    b2 = b2_ref[...]
    b3 = b3_ref[...]

    n_chunks = b_tile // row_chunk
    # Static (unrolled) chunk loop: keeps per-chunk live (rows,128) f32 values small
    # enough to limit vreg spills while the DMA tile stays large.
    for c in range(n_chunks):
        r0 = c * row_chunk                                  # static slice start
        # ---- actor_net MLP: bf16 operands on the MXU, f32 accumulation ----
        x = x_ref[r0:r0 + row_chunk, :].astype(jnp.bfloat16)
        h1 = jnp.maximum(
            jnp.dot(x, w1, preferred_element_type=jnp.float32) + b1, 0.0)
        h2 = jnp.maximum(
            jnp.dot(h1.astype(jnp.bfloat16), w2,
                    preferred_element_type=jnp.float32) + b2, 0.0)
        # last layer zero-padded to 128 output lanes -> lane-dense matmul + store
        logits = jnp.dot(h2.astype(jnp.bfloat16), w3,
                         preferred_element_type=jnp.float32) + b3   # (rows, 128)

        lane = jax.lax.broadcasted_iota(jnp.int32, (row_chunk, LANES), 1)
        valid = lane < n_actions
        logits_m = jnp.where(valid, logits, jnp.float32(-1e30))    # mask pad lanes

        # ---- softmax pieces (reused by the sampler) ----
        m = jnp.max(logits_m, axis=-1, keepdims=True)
        p = jnp.exp(logits_m - m)                                   # masked -> 0
        lse = m + jnp.log(jnp.sum(p, axis=-1, keepdims=True))

        # ---- stateless hash RNG: uniform (0,1) per element ----
        rows = tile_row0 + r0 + jax.lax.broadcasted_iota(
            jnp.int32, (row_chunk, LANES), 0)
        ctr = (rows * LANES + lane).astype(jnp.uint32)
        bits = _mix32(ctr * jnp.uint32(0x9E3779B9) + seed * jnp.uint32(0x85EBCA6B))
        b24 = (bits >> 8).astype(jnp.int32)                         # 24 high bits
        u = (b24.astype(jnp.float32) + 0.5) * jnp.float32(1.0 / (1 << 24))
        e = -jnp.log(u)                                             # Exp(1) noise

        # ---- Categorical(logits).sample() via exponential race: argmin(E / p) ----
        ratio = jnp.where(valid, e / p, jnp.float32(jnp.inf))
        rmin = jnp.min(ratio, axis=-1, keepdims=True)
        action = jnp.min(jnp.where(ratio <= rmin, lane, LANES),
                         axis=-1, keepdims=True)                    # first argmin

        # ---- log_prob of the sampled action ----
        logp = jnp.sum(jnp.where(lane == action, logits_m - lse, 0.0),
                       axis=-1, keepdims=True)
        logp_hi = logp.astype(jnp.bfloat16).astype(jnp.float32)     # hi/lo split
        logp_lo = logp - logp_hi                                    # keeps ~f32 acc.

        # ---- pack into one lane-dense bf16 slab (single unmasked store) ----
        slab = jnp.where(lane == LOGP_HI_LANE, logp_hi, logits_m)
        slab = jnp.where(lane == LOGP_LO_LANE, logp_lo, slab)
        slab = jnp.where(lane == ACT_LANE, action.astype(jnp.float32), slab)
        out_ref[r0:r0 + row_chunk, :] = slab.astype(jnp.bfloat16)


def _round_up(x, m):
    return ((x + m - 1) // m) * m


def _pick_b_tile(batch, b_tile_max=1024):
    """Multiple of 128, as large as possible, but keep >=2 grid steps (v7x)."""
    bt = _round_up(max(pl.cdiv(batch, 2), 1), 128)
    return max(min(bt, b_tile_max), 128)


def actor_categorical_forward(states, params, key, b_tile=None):
    """Returns (logits, actions, log_prob_of_actions)."""
    w1, b1, w2, b2, w3, b3 = params
    B, obs_dim = states.shape
    n_actions = w3.shape[1]
    assert n_actions <= LANES - 3, "output packing needs three spare lanes"

    if b_tile is None:
        b_tile = _pick_b_tile(B)
    row_chunk = 256 if b_tile % 256 == 0 else 128
    nb = pl.cdiv(B, b_tile)

    # bf16 matmul operands (halves resident weight VMEM); biases stay f32.
    # Pad the last layer to 128 output lanes with zeros (lane-dense output).
    w1b = w1.astype(jnp.bfloat16)
    w2b = w2.astype(jnp.bfloat16)
    w3b = jnp.pad(w3, ((0, 0), (0, LANES - n_actions))).astype(jnp.bfloat16)
    b3p = jnp.pad(b3, ((0, 0), (0, LANES - n_actions)))

    # int32 seed for the in-kernel hash RNG, derived from the JAX key.
    seed = jax.random.randint(key, (1,), 0, jnp.iinfo(jnp.int32).max,
                              dtype=jnp.int32)

    grid_spec = pltpu.PrefetchScalarGridSpec(
        num_scalar_prefetch=1,
        grid=(nb,),
        in_specs=[
            pl.BlockSpec((b_tile, obs_dim), lambda i, seed: (i, 0)),  # states tile
            pl.BlockSpec(w1b.shape, lambda i, seed: (0, 0)),          # resident
            pl.BlockSpec(b1.shape, lambda i, seed: (0, 0)),
            pl.BlockSpec(w2b.shape, lambda i, seed: (0, 0)),
            pl.BlockSpec(b2.shape, lambda i, seed: (0, 0)),
            pl.BlockSpec(w3b.shape, lambda i, seed: (0, 0)),
            pl.BlockSpec(b3p.shape, lambda i, seed: (0, 0)),
        ],
        out_specs=pl.BlockSpec((b_tile, LANES), lambda i, seed: (i, 0)),
    )

    kern = functools.partial(actor_categorical_kernel, n_actions=n_actions,
                             b_tile=b_tile, row_chunk=row_chunk)
    out = pl.pallas_call(
        kern,
        out_shape=jax.ShapeDtypeStruct((B, LANES), jnp.bfloat16),
        grid_spec=grid_spec,
        compiler_params=pltpu.CompilerParams(
            dimension_semantics=("parallel",)),   # lets v7x shard batch over 2 TCs
    )(seed, states, w1b, b1, w2b, b2, w3b, b3p)

    logits = out[:, :n_actions].astype(jnp.float32)
    logp = out[:, LOGP_HI_LANE].astype(jnp.float32) + \
        out[:, LOGP_LO_LANE].astype(jnp.float32)
    actions = out[:, ACT_LANE].astype(jnp.int32)   # small ints, exact in bf16
    return logits, actions, logp


def get_log_prob(logits, actions):
    """Mirror of ActorCategorical.get_log_prob for arbitrary actions (pure JAX)."""
    lp = jax.nn.log_softmax(logits, axis=-1)
    return jnp.take_along_axis(lp, actions[:, None].astype(jnp.int32), axis=-1)[:, 0]


def init_params(key, obs_dim, hidden, n_actions):
    ks = jax.random.split(key, 6)

    def lin(kw, kb, fan_in, fan_out):
        bound = 1.0 / (fan_in ** 0.5)
        w = jax.random.uniform(kw, (fan_in, fan_out), jnp.float32, -bound, bound)
        b = jax.random.uniform(kb, (1, fan_out), jnp.float32, -bound, bound)
        return w, b

    w1, b1 = lin(ks[0], ks[1], obs_dim, hidden)
    w2, b2 = lin(ks[2], ks[3], hidden, hidden)
    w3, b3 = lin(ks[4], ks[5], hidden, n_actions)
    return (w1, b1, w2, b2, w3, b3)


if __name__ == "__main__":
    B, OBS, HIDDEN, N_ACTIONS = 256, 32, 128, 8   # -> grid of 2 tiles of 128 rows

    root = jax.random.PRNGKey(0)
    k_param, k_state, k_sample = jax.random.split(root, 3)

    params = init_params(k_param, OBS, HIDDEN, N_ACTIONS)
    states = jax.random.normal(k_state, (B, OBS), dtype=jnp.float32)

    logits, actions, logp = actor_categorical_forward(states, params, k_sample)
    jax.block_until_ready((logits, actions, logp))

    # ---- correctness check against a bf16-precision pure-JAX reference ----
    w1, b1, w2, b2, w3, b3 = params
    h1 = jnp.maximum(jnp.dot(states.astype(jnp.bfloat16), w1.astype(jnp.bfloat16),
                             preferred_element_type=jnp.float32) + b1, 0.0)
    h2 = jnp.maximum(jnp.dot(h1.astype(jnp.bfloat16), w2.astype(jnp.bfloat16),
                             preferred_element_type=jnp.float32) + b2, 0.0)
    ref_logits = jnp.dot(h2.astype(jnp.bfloat16), w3.astype(jnp.bfloat16),
                         preferred_element_type=jnp.float32) + b3

    assert logits.shape == (B, N_ACTIONS)
    assert jnp.allclose(logits, ref_logits, atol=2e-2, rtol=2e-2)
    assert actions.shape == (B,) and actions.dtype == jnp.int32
    assert bool(jnp.all((actions >= 0) & (actions < N_ACTIONS)))
    ref_logp = get_log_prob(ref_logits, actions)
    assert jnp.allclose(logp, ref_logp, atol=2e-2, rtol=2e-2)
    assert bool(jnp.all(logp <= 0.0))

    print("KERNEL_OK")
</pallas_src>

<mosaic_0001>
module attributes {stable_mosaic.version = 11 : i64} {
  func.func @actor_categorical_kernel(%arg0: i32, %arg1: memref<1xi32, #tpu.memory_space<smem>>, %arg2: memref<128x32xf32, #tpu.memory_space<vmem>>, %arg3: memref<32x128xbf16, #tpu.memory_space<vmem>>, %arg4: memref<1x128xf32, #tpu.memory_space<vmem>>, %arg5: memref<128x128xbf16, #tpu.memory_space<vmem>>, %arg6: memref<1x128xf32, #tpu.memory_space<vmem>>, %arg7: memref<128x128xbf16, #tpu.memory_space<vmem>>, %arg8: memref<1x128xf32, #tpu.memory_space<vmem>>, %arg9: memref<128x128xbf16, #tpu.memory_space<vmem>>) attributes {dimension_semantics = [#tpu.dimension_semantics<parallel>], iteration_bounds = array<i64: 2>, scalar_prefetch = 1 : i64, scratch_operands = 0 : i64, tpu.core_type = #tpu.core_type<tc>, window_params = [{transform_indices = @transform_0, window_bounds = array<i64: 128, 32>}, {pipeline_mode = #tpu.pipeline_mode<synchronous>, transform_indices = @transform_1, window_bounds = array<i64: 32, 128>}, {pipeline_mode = #tpu.pipeline_mode<synchronous>, transform_indices = @transform_2, window_bounds = array<i64: 1, 128>}, {pipeline_mode = #tpu.pipeline_mode<synchronous>, transform_indices = @transform_3, window_bounds = array<i64: 128, 128>}, {pipeline_mode = #tpu.pipeline_mode<synchronous>, transform_indices = @transform_4, window_bounds = array<i64: 1, 128>}, {pipeline_mode = #tpu.pipeline_mode<synchronous>, transform_indices = @transform_5, window_bounds = array<i64: 128, 128>}, {pipeline_mode = #tpu.pipeline_mode<synchronous>, transform_indices = @transform_6, window_bounds = array<i64: 1, 128>}, {transform_indices = @transform_7, window_bounds = array<i64: 128, 128>}]} {
    %c0 = arith.constant 0 : index
    %0 = memref.load %arg1[%c0] : memref<1xi32, #tpu.memory_space<smem>>
    %c128_i32 = arith.constant 128 : i32
    %1 = arith.muli %arg0, %c128_i32 : i32
    %c0_0 = arith.constant 0 : index
    %c0_1 = arith.constant 0 : index
    %2 = vector.load %arg3[%c0_0, %c0_1] : memref<32x128xbf16, #tpu.memory_space<vmem>>, vector<32x128xbf16>
    %c0_2 = arith.constant 0 : index
    %c0_3 = arith.constant 0 : index
    %3 = vector.load %arg5[%c0_2, %c0_3] : memref<128x128xbf16, #tpu.memory_space<vmem>>, vector<128x128xbf16>
    %c0_4 = arith.constant 0 : index
    %c0_5 = arith.constant 0 : index
    %4 = vector.load %arg7[%c0_4, %c0_5] : memref<128x128xbf16, #tpu.memory_space<vmem>>, vector<128x128xbf16>
    %c0_6 = arith.constant 0 : index
    %c0_7 = arith.constant 0 : index
    %5 = vector.load %arg4[%c0_6, %c0_7] : memref<1x128xf32, #tpu.memory_space<vmem>>, vector<1x128xf32>
    %c0_8 = arith.constant 0 : index
    %c0_9 = arith.constant 0 : index
    %6 = vector.load %arg6[%c0_8, %c0_9] : memref<1x128xf32, #tpu.memory_space<vmem>>, vector<1x128xf32>
    %c0_10 = arith.constant 0 : index
    %c0_11 = arith.constant 0 : index
    %7 = vector.load %arg8[%c0_10, %c0_11] : memref<1x128xf32, #tpu.memory_space<vmem>>, vector<1x128xf32>
    %c0_12 = arith.constant 0 : index
    %c0_13 = arith.constant 0 : index
    %8 = vector.load %arg2[%c0_12, %c0_13] : memref<128x32xf32, #tpu.memory_space<vmem>>, vector<128x32xf32>
    %9 = arith.truncf %8 : vector<128x32xf32> to vector<128x32xbf16>
    %cst = arith.constant dense<0.000000e+00> : vector<128x128xf32>
    %10 = tpu.matmul %9, %2, %cst {dimension_numbers = #tpu.dot_dimension_numbers<[1], [0], [0], [1], [0, 0, 1, 1], [], []>} : vector<128x32xbf16>, vector<32x128xbf16>, vector<128x128xf32> -> vector<128x128xf32>
    %11 = vector.broadcast %5 : vector<1x128xf32> to vector<128x128xf32>
    %12 = arith.addf %10, %11 : vector<128x128xf32>
    %cst_14 = arith.constant 0.000000e+00 : f32
    %13 = vector.broadcast %cst_14 : f32 to vector<128x128xf32>
    %14 = arith.maximumf %12, %13 : vector<128x128xf32>
    %15 = arith.truncf %14 : vector<128x128xf32> to vector<128x128xbf16>
    %cst_15 = arith.constant dense<0.000000e+00> : vector<128x128xf32>
    %16 = tpu.matmul %15, %3, %cst_15 {dimension_numbers = #tpu.dot_dimension_numbers<[1], [0], [0], [1], [0, 0, 1, 1], [], []>} : vector<128x128xbf16>, vector<128x128xbf16>, vector<128x128xf32> -> vector<128x128xf32>
    %17 = vector.broadcast %6 : vector<1x128xf32> to vector<128x128xf32>
    %18 = arith.addf %16, %17 : vector<128x128xf32>
    %cst_16 = arith.constant 0.000000e+00 : f32
    %19 = vector.broadcast %cst_16 : f32 to vector<128x128xf32>
    %20 = arith.maximumf %18, %19 : vector<128x128xf32>
    %21 = arith.truncf %20 : vector<128x128xf32> to vector<128x128xbf16>
    %cst_17 = arith.constant dense<0.000000e+00> : vector<128x128xf32>
    %22 = tpu.matmul %21, %4, %cst_17 {dimension_numbers = #tpu.dot_dimension_numbers<[1], [0], [0], [1], [0, 0, 1, 1], [], []>} : vector<128x128xbf16>, vector<128x128xbf16>, vector<128x128xf32> -> vector<128x128xf32>
    %23 = vector.broadcast %7 : vector<1x128xf32> to vector<128x128xf32>
    %24 = arith.addf %22, %23 : vector<128x128xf32>
    %25 = tpu.iota {dimensions = array<i32: 1>} : vector<128x128xi32>
    %c8_i32 = arith.constant 8 : i32
    %26 = vector.broadcast %c8_i32 : i32 to vector<128x128xi32>
    %27 = arith.cmpi slt, %25, %26 : vector<128x128xi32>
    %cst_18 = arith.constant -1.000000e+30 : f32
    %28 = vector.broadcast %cst_18 : f32 to vector<128x128xf32>
    %29 = arith.select %27, %24, %28 : vector<128x128xi1>, vector<128x128xf32>
    %cst_19 = arith.constant dense<0xFF800000> : vector<128xf32>
    %30 = vector.multi_reduction <maximumf>, %29, %cst_19 [1] : vector<128x128xf32> to vector<128xf32>
    %31 = vector.shape_cast %30 : vector<128xf32> to vector<128x1xf32>
    %32 = vector.broadcast %31 : vector<128x1xf32> to vector<128x128xf32>
    %33 = arith.subf %29, %32 : vector<128x128xf32>
    %34 = math.exp %33 : vector<128x128xf32>
    %cst_20 = arith.constant dense<0.000000e+00> : vector<128xf32>
    %35 = vector.multi_reduction <add>, %34, %cst_20 [1] : vector<128x128xf32> to vector<128xf32>
    %36 = vector.shape_cast %35 : vector<128xf32> to vector<128x1xf32>
    %37 = math.log %36 : vector<128x1xf32>
    %38 = arith.addf %31, %37 : vector<128x1xf32>
    %c0_i32 = arith.constant 0 : i32
    %39 = arith.addi %1, %c0_i32 : i32
    %40 = tpu.iota {dimensions = array<i32: 0>} : vector<128x128xi32>
    %41 = vector.broadcast %39 : i32 to vector<128x128xi32>
    %42 = arith.addi %41, %40 : vector<128x128xi32>
    %c128_i32_21 = arith.constant 128 : i32
    %43 = vector.broadcast %c128_i32_21 : i32 to vector<128x128xi32>
    %44 = arith.muli %42, %43 : vector<128x128xi32>
    %45 = arith.addi %44, %25 : vector<128x128xi32>
    %c-1640531527_i32 = arith.constant -1640531527 : i32
    %46 = vector.broadcast %c-1640531527_i32 : i32 to vector<128x128xi32>
    %47 = arith.muli %45, %46 : vector<128x128xi32>
    %c-2048144789_i32 = arith.constant -2048144789 : i32
    %48 = arith.muli %0, %c-2048144789_i32 : i32
    %49 = vector.broadcast %48 : i32 to vector<128x128xi32>
    %50 = arith.addi %47, %49 : vector<128x128xi32>
    %c16_i32 = arith.constant 16 : i32
    %51 = vector.broadcast %c16_i32 : i32 to vector<128x128xi32>
    %52 = arith.shrui %50, %51 : vector<128x128xi32>
    %53 = arith.xori %50, %52 : vector<128x128xi32>
    %c2146121005_i32 = arith.constant 2146121005 : i32
    %54 = vector.broadcast %c2146121005_i32 : i32 to vector<128x128xi32>
    %55 = arith.muli %53, %54 : vector<128x128xi32>
    %c15_i32 = arith.constant 15 : i32
    %56 = vector.broadcast %c15_i32 : i32 to vector<128x128xi32>
    %57 = arith.shrui %55, %56 : vector<128x128xi32>
    %58 = arith.xori %55, %57 : vector<128x128xi32>
    %c-2073254261_i32 = arith.constant -2073254261 : i32
    %59 = vector.broadcast %c-2073254261_i32 : i32 to vector<128x128xi32>
    %60 = arith.muli %58, %59 : vector<128x128xi32>
    %c16_i32_22 = arith.constant 16 : i32
    %61 = vector.broadcast %c16_i32_22 : i32 to vector<128x128xi32>
    %62 = arith.shrui %60, %61 : vector<128x128xi32>
    %63 = arith.xori %60, %62 : vector<128x128xi32>
    %c8_i32_23 = arith.constant 8 : i32
    %64 = vector.broadcast %c8_i32_23 : i32 to vector<128x128xi32>
    %65 = arith.shrui %63, %64 : vector<128x128xi32>
    %66 = arith.sitofp %65 : vector<128x128xi32> to vector<128x128xf32>
    %cst_24 = arith.constant 5.000000e-01 : f32
    %67 = vector.broadcast %cst_24 : f32 to vector<128x128xf32>
    %68 = arith.addf %66, %67 : vector<128x128xf32>
    %cst_25 = arith.constant 5.96046448E-8 : f32
    %69 = vector.broadcast %cst_25 : f32 to vector<128x128xf32>
    %70 = arith.mulf %68, %69 : vector<128x128xf32>
    %71 = math.log %70 : vector<128x128xf32>
    %cst_26 = arith.constant 0.000000e+00 : f32
    %72 = vector.broadcast %cst_26 : f32 to vector<128x128xf32>
    %73 = arith.subf %72, %71 : vector<128x128xf32>
    %74 = arith.divf %73, %34 : vector<128x128xf32>
    %cst_27 = arith.constant 0x7F800000 : f32
    %75 = vector.broadcast %cst_27 : f32 to vector<128x128xf32>
    %76 = arith.select %27, %74, %75 : vector<128x128xi1>, vector<128x128xf32>
    %cst_28 = arith.constant dense<0x7F800000> : vector<128xf32>
    %77 = vector.multi_reduction <minimumf>, %76, %cst_28 [1] : vector<128x128xf32> to vector<128xf32>
    %78 = vector.shape_cast %77 : vector<128xf32> to vector<128x1xf32>
    %79 = vector.broadcast %78 : vector<128x1xf32> to vector<128x128xf32>
    %80 = arith.cmpf ole, %76, %79 : vector<128x128xf32>
    %c128_i32_29 = arith.constant 128 : i32
    %81 = vector.broadcast %c128_i32_29 : i32 to vector<128x128xi32>
    %82 = arith.select %80, %25, %81 : vector<128x128xi1>, vector<128x128xi32>
    %cst_30 = arith.constant dense<2147483647> : vector<128xi32>
    %83 = vector.multi_reduction <minsi>, %82, %cst_30 [1] : vector<128x128xi32> to vector<128xi32>
    %84 = vector.shape_cast %83 : vector<128xi32> to vector<128x1xi32>
    %85 = vector.broadcast %84 : vector<128x1xi32> to vector<128x128xi32>
    %86 = arith.cmpi eq, %25, %85 : vector<128x128xi32>
    %87 = vector.broadcast %38 : vector<128x1xf32> to vector<128x128xf32>
    %88 = arith.subf %29, %87 : vector<128x128xf32>
    %cst_31 = arith.constant 0.000000e+00 : f32
    %89 = vector.broadcast %cst_31 : f32 to vector<128x128xf32>
    %90 = arith.select %86, %88, %89 : vector<128x128xi1>, vector<128x128xf32>
    %cst_32 = arith.constant dense<0.000000e+00> : vector<128xf32>
    %91 = vector.multi_reduction <add>, %90, %cst_32 [1] : vector<128x128xf32> to vector<128xf32>
    %92 = vector.shape_cast %91 : vector<128xf32> to vector<128x1xf32>
    %93 = arith.truncf %92 : vector<128x1xf32> to vector<128x1xbf16>
    %94 = arith.extf %93 : vector<128x1xbf16> to vector<128x1xf32>
    %95 = arith.subf %92, %94 : vector<128x1xf32>
    %c125_i32 = arith.constant 125 : i32
    %96 = vector.broadcast %c125_i32 : i32 to vector<128x128xi32>
    %97 = arith.cmpi eq, %25, %96 : vector<128x128xi32>
    %98 = vector.shape_cast %94 : vector<128x1xf32> to vector<128x1xf32>
    %99 = vector.broadcast %98 : vector<128x1xf32> to vector<128x128xf32>
    %100 = arith.select %97, %99, %29 : vector<128x128xi1>, vector<128x128xf32>
    %c126_i32 = arith.constant 126 : i32
    %101 = vector.broadcast %c126_i32 : i32 to vector<128x128xi32>
    %102 = arith.cmpi eq, %25, %101 : vector<128x128xi32>
    %103 = vector.shape_cast %95 : vector<128x1xf32> to vector<128x1xf32>
    %104 = vector.broadcast %103 : vector<128x1xf32> to vector<128x128xf32>
    %105 = arith.select %102, %104, %100 : vector<128x128xi1>, vector<128x128xf32>
    %c127_i32 = arith.constant 127 : i32
    %106 = vector.broadcast %c127_i32 : i32 to vector<128x128xi32>
    %107 = arith.cmpi eq, %25, %106 : vector<128x128xi32>
    %108 = arith.sitofp %84 : vector<128x1xi32> to vector<128x1xf32>
    %109 = vector.shape_cast %108 : vector<128x1xf32> to vector<128x1xf32>
    %110 = vector.broadcast %109 : vector<128x1xf32> to vector<128x128xf32>
    %111 = arith.select %107, %110, %105 : vector<128x128xi1>, vector<128x128xf32>
    %112 = arith.truncf %111 : vector<128x128xf32> to vector<128x128xbf16>
    %c0_33 = arith.constant 0 : index
    %c0_34 = arith.constant 0 : index
    %113 = vector.load %arg9[%c0_33, %c0_34] : memref<128x128xbf16, #tpu.memory_space<vmem>>, vector<128x128xbf16>
    tpu.vector_store %arg9[%c0_33, %c0_34], %112 {strides = array<i32>} : memref<128x128xbf16, #tpu.memory_space<vmem>>, vector<128x128xbf16>,
    return
  }
  func.func @transform_0(%arg0: i32, %arg1: memref<1xi32, #tpu.memory_space<smem>>) -> (i32, i32) {
    %c0_i32 = arith.constant 0 : i32
    %c0_i32_0 = arith.constant 0 : i32
    return %arg0, %c0_i32 : i32, i32
  }
  func.func @transform_1(%arg0: i32, %arg1: memref<1xi32, #tpu.memory_space<smem>>) -> (i32, i32) {
    %c0_i32 = arith.constant 0 : i32
    %c0_i32_0 = arith.constant 0 : i32
    %c0_i32_1 = arith.constant 0 : i32
    return %c0_i32, %c0_i32_0 : i32, i32
  }
  func.func @transform_2(%arg0: i32, %arg1: memref<1xi32, #tpu.memory_space<smem>>) -> (i32, i32) {
    %c0_i32 = arith.constant 0 : i32
    %c0_i32_0 = arith.constant 0 : i32
    %c0_i32_1 = arith.constant 0 : i32
    return %c0_i32, %c0_i32_0 : i32, i32
  }
  func.func @transform_3(%arg0: i32, %arg1: memref<1xi32, #tpu.memory_space<smem>>) -> (i32, i32) {
    %c0_i32 = arith.constant 0 : i32
    %c0_i32_0 = arith.constant 0 : i32
    %c0_i32_1 = arith.constant 0 : i32
    return %c0_i32, %c0_i32_0 : i32, i32
  }
  func.func @transform_4(%arg0: i32, %arg1: memref<1xi32, #tpu.memory_space<smem>>) -> (i32, i32) {
    %c0_i32 = arith.constant 0 : i32
    %c0_i32_0 = arith.constant 0 : i32
    %c0_i32_1 = arith.constant 0 : i32
    return %c0_i32, %c0_i32_0 : i32, i32
  }
  func.func @transform_5(%arg0: i32, %arg1: memref<1xi32, #tpu.memory_space<smem>>) -> (i32, i32) {
    %c0_i32 = arith.constant 0 : i32
    %c0_i32_0 = arith.constant 0 : i32
    %c0_i32_1 = arith.constant 0 : i32
    return %c0_i32, %c0_i32_0 : i32, i32
  }
  func.func @transform_6(%arg0: i32, %arg1: memref<1xi32, #tpu.memory_space<smem>>) -> (i32, i32) {
    %c0_i32 = arith.constant 0 : i32
    %c0_i32_0 = arith.constant 0 : i32
    %c0_i32_1 = arith.constant 0 : i32
    return %c0_i32, %c0_i32_0 : i32, i32
  }
  func.func @transform_7(%arg0: i32, %arg1: memref<1xi32, #tpu.memory_space<smem>>) -> (i32, i32) {
    %c0_i32 = arith.constant 0 : i32
    %c0_i32_0 = arith.constant 0 : i32
    return %arg0, %c0_i32 : i32, i32
  }
}

</mosaic_0001>

<bundles_post_ra>
// kernel: tpu_custom_call.1
= control target key start
LH: loop header
LB: loop body
LE: loop exit
PB: predicated region body
PF: predicated region fallthrough
CT: control target
= control target key end

     0   :  { %s3688_s0 = inlined_call_operand.<no memory space> [shape: s32[1], index: 0, kind: input, shape index: {}]   ;;  %s3689_s1 = inlined_call_operand.vmem [shape: f32[256,32], index: 1, kind: input, shape index: {}]   ;;  %s3690_s2 = inlined_call_operand.vmem [shape: bf16[32,128], index: 2, kind: input, shape index: {}]   ;;  %s3691_s3 = inlined_call_operand.vmem [shape: f32[1,128], index: 3, kind: input, shape index: {}]   ;;  %s3692_s4 = inlined_call_operand.vmem [shape: bf16[128,128], index: 4, kind: input, shape index: {}]   ;;  %s3693_s5 = inlined_call_operand.vmem [shape: f32[1,128], index: 5, kind: input, shape index: {}]   ;;  %s3694_s6 = inlined_call_operand.vmem [shape: bf16[128,128], index: 6, kind: input, shape index: {}]   ;;  %s3695_s7 = inlined_call_operand.vmem [shape: f32[1,128], index: 7, kind: input, shape index: {}]   ;;  %s3696_s8 = inlined_call_operand.hbm [shape: bf16[256,128], index: 8, kind: output, shape index: {}]  }
   0x1   :  { %13 = sst [smem:[#allocation3]] %s3688_s0 }
   0x2   :  { %14 = vsyncpa [#allocation5], 0 }
   0x3   :  { %16 = vsyncpa [#allocation5 + $0x1], 0  ;;  %s2586_s29 = smov 0   ;;  %s2588_s30 = smov 0  }
   0x4   :  { %s2590_s9 = smov 0   ;;  %s2592_s10 = smov 0  }
   0x5 LB: > { %s2607_s0 = sadd.s32 4294967295, %s2533_s10   ;;  %s2036_s11 = sadd.s32 4294967294, %s2533_s10   ;;  %s2533_s10 = sphi %s2592_s10, %s3780_s10   ;;  %s2529_s9 = sphi %s2590_s9, %s3779_s9   ;;  %s2525_s30 = sphi %s2588_s30, %s3778_s30   ;;  %s2521_s29 = sphi %s2586_s29, %s3777_s29  }
   0x6   : > { %s2611_s12 = sadd.s32 1, %s2533_s10   ;;  %s181_s13 = sadd.s32 1, %s2529_s9 }
   0x7   : > { %s178_s14 = ssub.s32 %s2533_s10, %s2611_s12  ;;  %p191_p0 = scmp.ne.s32.totalorder %s2529_s9, %s2525_s30 }
   0x8   : > { %p179_p1 = scmp.eq.s32.totalorder %s178_s14, 0  ;;  %p192_p2 = scmp.eq.s32.totalorder %s2607_s0, 1 }
   0x9   : > { %p197_p3 = scmp.ne.s32.totalorder %s2525_s30, %s2521_s29  ;;  %p198_p4 = scmp.eq.s32.totalorder %s2036_s11, 1 }
   0xa   : > { %s2622_s15 = scalar_select %p179_p1, %s2529_s9, %s181_s13  }
   0xb   : > { %p2624_p5 = por %p192_p2, %p191_p0  ;;  %p2628_p6 = por %p198_p4, %p197_p3 }
   0xc   : > { %p2039_p7 = scmp.ge.s32.totalorder %s2533_s10, 1  ;;  %p243_p8 = scmp.lt.s32.totalorder %s2533_s10, 3 }
   0xe   : > { %p244_p9 = pnand %p2039_p7, %p243_p8 }
  0x10   : > { %247 = sbr.rel (%p244_p9) target bundleno = 1503 (0x5df), region = 48 }
  0x17   : > { %v2325_v0 = vld [vmem:[%s3690_s2] sm:$0xff]   ;;  %s2041_s20 = sshll.u32 %s2607_s0, 4  ;;  %v2326_v1 = vld [vmem:[%s3690_s2 + $0x8] sm:$0xff]   ;;  %v2329_v4 = vld [vmem:[%s3692_s4 + $0x10] sm:$0xff]   ;;  %vm366_vm0 = vcmask 261120   ;;  %s2043_s23 = sshll.u32 %s2607_s0, 7 }
  0x18   : > { %p276_p10 = scmp.lt.s32.totalorder %s2041_s20, 31  ;;  %2200 = vmatprep.subr.bf16.mxu0 %v2325_v0  ;;  %v2327_v2 = vld [vmem:[%s3692_s4] sm:$0xff]   ;;  %v2328_v3 = vld [vmem:[%s3692_s4 + $0x8] sm:$0xff]   ;;  %v2330_v14 = vld [vmem:[%s3692_s4 + $0x18] sm:$0xff]   ;;  %s283_s24 = sld [smem:[#allocation3]] }
  0x19   : > { %2201 = vmatpush3.bf16.msra.mxu0 %v2325_v0  ;;  %2220 = vmatprep.subr.bf16.mxu1 %v2327_v2  ;;  %v2331_v18 = vld [vmem:[%s3692_s4 + $0x20] sm:$0xff]   ;;  %v2332_v22 = vld [vmem:[%s3692_s4 + $0x28] sm:$0xff]   ;;  %v2333_v32 = vld [vmem:[%s3692_s4 + $0x30] sm:$0xff]   ;;  %s272_s26 = sand.u32 1, %s2525_s30   ;;  %s2110_s11 = sshll.u32 %s2607_s0, 10 }
  0x1a   : > { %s3782_s20 = smov (!%p276_p10, %s2041_s20), 31  ;;  %2202 = vmatprep.subr.bf16.mxu0 %v2326_v1  ;;  %2221 = vmatpush3.bf16.msra.mxu1 %v2327_v2  ;;  %v2334_v33 = vld [vmem:[%s3692_s4 + $0x38] sm:$0xff]   ;;  %v2335_v34 = vld [vmem:[%s3694_s6] sm:$0xff]   ;;  %v2336_v35 = vld [vmem:[%s3694_s6 + $0x8] sm:$0xff]   ;;  %s3640_s18 = scalar_lea.hbm %s3696_s8, %s2110_s11 }
  0x1b   : > { %s2042_s27 = sshll.u32 %s3782_s20, 3  ;;  %2222 = vmatprep.subr.bf16.mxu1 %v2328_v3  ;;  %v2337_v36 = vld [vmem:[%s3694_s6 + $0x10] sm:$0xff]   ;;  %v2338_v37 = vld [vmem:[%s3694_s6 + $0x18] sm:$0xff]   ;;  %v2339_v38 = vld [vmem:[%s3694_s6 + $0x20] sm:$0xff]   ;;  %s3647_s19 = scalar_lea.sflag [#allocation5], %s272_s26 }
  0x1c   : > { %s2650_s13 = scalar_lea.vmem %s3689_s1, %s2042_s27  ;;  %v2340_v39 = vld [vmem:[%s3694_s6 + $0x28] sm:$0xff]   ;;  %v2044_v40 = vld [vmem:[%s3691_s3] ss:$0 sm:$0xff]  ;;  %s2040_s27 = sshll.u32 %s272_s26, 6 }
  0x1d   : > { %2203 = vmatpush3.bf16.msra.mxu0 %v2326_v1  ;;  %v324_v5 = vld [vmem:[%s2650_s13] sm:$0xff]  ;;  %v325_v6 = vld [vmem:[%s2650_s13 + $0x8] sm:$0xff]  ;;  %v326_v7 = vld [vmem:[%s2650_s13 + $0x10] sm:$0xff]  ;;  %s3522_s28 = scalar_lea.vmem [#allocation4], %s2040_s27  ;;  %s2535_s21 = smov [#allocation4]  }
  0x1e   : > { %v340_v8 = vpack.c.bf16 %v325_v6, %v324_v5  ;;  %v327_v9 = vld [vmem:[%s2650_s13 + $0x18] sm:$0xff]  ;;  %v328_v10 = vld [vmem:[%s2650_s13 + $0x20] sm:$0xff]  ;;  %v329_v11 = vld [vmem:[%s2650_s13 + $0x28] sm:$0xff]  ;;  %2223 = vmatpush3.bf16.msra.mxu1 %v2328_v3  ;;  %2252 = vmatprep.subr.bf16.mxu0 %v2335_v34  ;;  %s1099_s25 = smul.u32 2246822507, %s283_s24  ;;  %s1974_s14 = sshll.u32 %s3522_s28, 4  ;;  %s3642_s14 = int_to_ptr.vmem [resolvable:$true] %s1974_s14 }
  0x1f   : > { %v341_v12 = vpack.c.bf16 %v327_v9, %v326_v7  ;;  %v342_v13 = vpack.c.bf16 %v329_v11, %v328_v10  ;;  %2224 = vmatprep.subr.bf16.mxu1 %v2329_v4  ;;  %v330_v15 = vld [vmem:[%s2650_s13 + $0x30] sm:$0xff]  ;;  %v331_v16 = vld [vmem:[%s2650_s13 + $0x38] sm:$0xff]  ;;  %v332_v17 = vld [vmem:[%s2650_s13 + $0x40] sm:$0xff]  ;;  %s2471_s20 = scalar_lea.vmem %s3642_s14, 1024  ;;  %s2475_s22 = sshll.u32 %s2535_s21, 4  ;;  %s2476_s22 = int_to_ptr.vmem [resolvable:$false] %s2475_s22 }
  0x20   : > { %2204 = vmatprep.mubr.msk.bf16.mxu0 %vm366_vm0, %v340_v8  ;;  %v333_v19 = vld [vmem:[%s2650_s13 + $0x48] sm:$0xff]  ;;  %v343_v20 = vpack.c.bf16 %v331_v16, %v330_v15  ;;  %v334_v23 = vld [vmem:[%s2650_s13 + $0x50] sm:$0xff]  ;;  %v335_v24 = vld [vmem:[%s2650_s13 + $0x58] sm:$0xff]  ;;  %p2472_p11 = scmp.ne.s32.totalorder %s3642_s14, %s2471_s20  ;;  %p2478_p0 = scmp.lt.s32.totalorder %s3642_s14, %s2476_s22 }
  0x21   : > { %2205 = vmatmul.mubr.msk.bf16.vlgmr.msra.gmra.mrb[0].mxu0 %vm366_vm0, %v341_v12  ;;  %v344_v21 = vpack.c.bf16 %v333_v19, %v332_v17  ;;  %v336_v25 = vld [vmem:[%s2650_s13 + $0x60] sm:$0xff]  ;;  %v337_v26 = vld [vmem:[%s2650_s13 + $0x68] sm:$0xff]  ;;  %v345_v27 = vpack.c.bf16 %v335_v24, %v334_v23  ;;  %v338_v29 = vld [vmem:[%s2650_s13 + $0x70] sm:$0xff] }
  0x22   : > { %2208 = vmatprep.mubr.msk.bf16.mxu0 %vm366_vm0, %v342_v13  ;;  %2225 = vmatpush3.bf16.msra.mxu1 %v2329_v4  ;;  %v346_v28 = vpack.c.bf16 %v337_v26, %v336_v25  ;;  %v339_v30 = vld [vmem:[%s2650_s13 + $0x78] sm:$0xff]  ;;  %p2473_p12 = pnand %p2472_p11, %p2624_p5 }
  0x23   : > { %2226 = vmatprep.subr.bf16.mxu1 %v2330_v14  ;;  %v347_v31 = vpack.c.bf16 %v339_v30, %v338_v29  ;;  %2253 = vmatpush3.bf16.msra.mxu0 %v2335_v34  ;;  %v2342_v34 = vld [vmem:[%s3694_s6 + $0x38] sm:$0xff]  }
  0x24   : > { %2254 = vmatprep.subr.bf16.mxu0 %v2336_v35  ;;  %p2474_p13 = pneg %p2473_p12 }
  0x26   : > { %2227 = vmatpush3.bf16.msra.mxu1 %v2330_v14 }
  0x27   : > { %2228 = vmatprep.subr.bf16.mxu1 %v2331_v18  ;;  %2255 = vmatpush3.bf16.msra.mxu0 %v2336_v35  ;;  %v2055_v35 = vld [vmem:[%s3693_s5] ss:$0 sm:$0xff] }
  0x28   : > { %2256 = vmatprep.subr.bf16.mxu0 %v2337_v36 }
  0x29   : > { %2209 = vmatmul.mubr.msk.bf16.gmra.mrb[4].mxu0 %vm366_vm0, %v343_v20 }
  0x2a   : > { %2212 = vmatprep.mubr.msk.bf16.mxu0 %vm366_vm0, %v344_v21  ;;  %2229 = vmatpush3.bf16.msra.mxu1 %v2331_v18 }
  0x2b   : > { %2230 = vmatprep.subr.bf16.mxu1 %v2332_v22  ;;  %2257 = vmatpush3.bf16.msra.mxu0 %v2337_v36 }
  0x2c   : > { %2258 = vmatprep.subr.bf16.mxu0 %v2338_v37 }
  0x2e   : > { %2231 = vmatpush3.bf16.msra.mxu1 %v2332_v22 }
  0x2f   : > { %2232 = vmatprep.subr.bf16.mxu1 %v2333_v32  ;;  %2259 = vmatpush3.bf16.msra.mxu0 %v2338_v37 }
  0x30   : > { %2260 = vmatprep.subr.bf16.mxu0 %v2339_v38 }
  0x31   : > { %2213 = vmatmul.mubr.msk.bf16.gmra.mrb[8].mxu0 %vm366_vm0, %v345_v27 }
  0x32   : > { %2216 = vmatprep.mubr.msk.bf16.mxu0 %vm366_vm0, %v346_v28  ;;  %2233 = vmatpush3.bf16.msra.mxu1 %v2333_v32 }
  0x33   : > { %2234 = vmatprep.subr.bf16.mxu1 %v2334_v33  ;;  %2261 = vmatpush3.bf16.msra.mxu0 %v2339_v38 }
  0x34   : > { %2262 = vmatprep.subr.bf16.mxu0 %v2340_v39 }
  0x36   : > { %2235 = vmatpush3.bf16.msra.mxu1 %v2334_v33  ;;  %v2341_v33 = vld [vmem:[%s3694_s6 + $0x30] sm:$0xff]  }
  0x37   : > { %2263 = vmatpush3.bf16.msra.mxu0 %v2340_v39 }
  0x38   : > { %2264 = vmatprep.subr.bf16.mxu0 %v2341_v33 }
  0x39   : > { %2217 = vmatmul.mubr.msk.bf16.gmra.mrb[12].mxu0 %vm366_vm0, %v347_v31 }
  0x3b   : > { %2265 = vmatpush3.bf16.msra.mxu0 %v2341_v33 }
  0x3c   : > { %2266 = vmatprep.subr.bf16.mxu0 %v2342_v34 }
  0x3f   : > { %2267 = vmatpush3.bf16.msra.mxu0 %v2342_v34 }
  0xf4   : > { %v2206_v41 = vpop.f32.mrb[0].mxu0 }
  0xf5   : > { %v434_v42 = vadd.f32 %v2206_v41, %v2044_v40  ;;  %v425_v43 = vpop.f32.mrb[1].mxu0 }
  0xf6   : > { %v426_v44 = vadd.f32 %v2044_v40, %v425_v43  ;;  %v2207_v45 = vpop.f32.mrb[2].mxu0 }
  0xf7   : > { %v437_v46 = vadd.f32 %v2207_v45, %v2044_v40  ;;  %v428_v47 = vpop.f32.mrb[3].mxu0  ;;  %v490_v49 = vmax.f32 %v434_v42, 0.0 }
  0xf8   : > { %v429_v48 = vadd.f32 %v2044_v40, %v428_v47  ;;  %v488_v51 = vmax.f32 %v426_v44, 0.0 }
  0xf9   : > { %v491_v50 = vmax.f32 %v437_v46, 0.0 }
  0xfa   : > { %v489_v52 = vmax.f32 %v429_v48, 0.0 }
  0xfb   : > { %v505_v53 = vpack.c.bf16 %v491_v50, %v490_v49 }
  0xfc   : > { %v2210_v54 = vpop.f32.mrb[4].mxu0  ;;  %v504_v55 = vpack.c.bf16 %v489_v52, %v488_v51 }
  0xfd   : > { %v450_v56 = vadd.f32 %v2210_v54, %v2044_v40  ;;  %v441_v57 = vpop.f32.mrb[5].mxu0 }
  0xfe   : > { %v442_v58 = vadd.f32 %v2044_v40, %v441_v57  ;;  %v2211_v59 = vpop.f32.mrb[6].mxu0  ;;  %2236 = vmatprep.mubr.bf16.mxu1 %v504_v55 }
  0xff   : > { %v494_v60 = vmax.f32 %v450_v56, 0.0  ;;  %v453_v61 = vadd.f32 %v2211_v59, %v2044_v40  ;;  %v444_v62 = vpop.f32.mrb[7].mxu0  ;;  %2237 = vmatmul.mubr.bf16.vlgmr.msra.gmra.mrb[0].mxu1 %v505_v53 }
 0x100   : > { %v445_v63 = vadd.f32 %v2044_v40, %v444_v62  ;;  %v492_v1 = vmax.f32 %v442_v58, 0.0 }
 0x101   : > { %v495_v0 = vmax.f32 %v453_v61, 0.0 }
 0x102   : > { %v493_v2 = vmax.f32 %v445_v63, 0.0 }
 0x103   : > { %v507_v3 = vpack.c.bf16 %v495_v0, %v494_v60 }
 0x104   : > { %v506_v4 = vpack.c.bf16 %v493_v2, %v492_v1  ;;  %v2214_v5 = vpop.f32.mrb[8].mxu0 }
 0x105   : > { %v466_v6 = vadd.f32 %v2214_v5, %v2044_v40  ;;  %v457_v7 = vpop.f32.mrb[9].mxu0 }
 0x106   : > { %v458_v8 = vadd.f32 %v2044_v40, %v457_v7  ;;  %v2215_v9 = vpop.f32.mrb[10].mxu0  ;;  %2240 = vmatprep.mubr.bf16.mxu1 %v506_v4 }
 0x107   : > { %v498_v10 = vmax.f32 %v466_v6, 0.0  ;;  %v469_v11 = vadd.f32 %v2215_v9, %v2044_v40  ;;  %v460_v12 = vpop.f32.mrb[11].mxu0  ;;  %2241 = vmatmul.mubr.bf16.gmra.mrb[4].mxu1 %v507_v3 }
 0x108   : > { %v461_v13 = vadd.f32 %v2044_v40, %v460_v12  ;;  %v496_v15 = vmax.f32 %v458_v8, 0.0 }
 0x109   : > { %v499_v14 = vmax.f32 %v469_v11, 0.0 }
 0x10a   : > { %v497_v16 = vmax.f32 %v461_v13, 0.0 }
 0x10b   : > { %v509_v17 = vpack.c.bf16 %v499_v14, %v498_v10 }
 0x10c   : > { %v508_v18 = vpack.c.bf16 %v497_v16, %v496_v15  ;;  %v2218_v19 = vpop.f32.mrb[12].mxu0 }
 0x10d   : > { %v482_v20 = vadd.f32 %v2218_v19, %v2044_v40  ;;  %v473_v21 = vpop.f32.mrb[13].mxu0 }
 0x10e   : > { %v474_v22 = vadd.f32 %v2044_v40, %v473_v21  ;;  %v2219_v23 = vpop.f32.mrb[14].mxu0  ;;  %2244 = vmatprep.mubr.bf16.mxu1 %v508_v18 }
 0x10f   : > { %v502_v24 = vmax.f32 %v482_v20, 0.0  ;;  %v485_v25 = vadd.f32 %v2219_v23, %v2044_v40  ;;  %v476_v26 = vpop.f32.mrb[15].mxu0  ;;  %2245 = vmatmul.mubr.bf16.gmra.mrb[8].mxu1 %v509_v17 }
 0x110   : > { %v477_v27 = vadd.f32 %v2044_v40, %v476_v26  ;;  %v500_v29 = vmax.f32 %v474_v22, 0.0 }
 0x111   : > { %v503_v28 = vmax.f32 %v485_v25, 0.0 }
 0x112   : > { %v501_v30 = vmax.f32 %v477_v27, 0.0 }
 0x113   : > { %v511_v31 = vpack.c.bf16 %v503_v28, %v502_v24  ;;  %v838_v28 = vlaneseq }
 0x114   : > { %v510_v32 = vpack.c.bf16 %v501_v30, %v500_v29  ;;  %v2064_v30 = vld [vmem:[%s3695_s7] ss:$0 sm:$0xff] }
 0x115   : > { %v2725_v29 = vand.u32 127, %v838_v28 }
 0x116   : > { %2248 = vmatprep.mubr.bf16.mxu1 %v510_v32 }
 0x117   : > { %2249 = vmatmul.mubr.bf16.gmra.mrb[12].mxu1 %v511_v31  ;;  %vm840_vm1 = vcmp.lt.s32.totalorder %v2725_v29, 8 }
 0x1d2   : > { %v2238_v36 = vpop.f32.mrb[0].mxu1 }
 0x1d3   : > { %v609_v37 = vadd.f32 %v2238_v36, %v2055_v35  ;;  %v600_v38 = vpop.f32.mrb[1].mxu1 }
 0x1d4   : > { %v601_v39 = vadd.f32 %v2055_v35, %v600_v38  ;;  %v2239_v40 = vpop.f32.mrb[2].mxu1 }
 0x1d5   : > { %v612_v41 = vadd.f32 %v2239_v40, %v2055_v35  ;;  %v603_v42 = vpop.f32.mrb[3].mxu1  ;;  %v665_v44 = vmax.f32 %v609_v37, 0.0 }
 0x1d6   : > { %v604_v43 = vadd.f32 %v2055_v35, %v603_v42  ;;  %v663_v46 = vmax.f32 %v601_v39, 0.0 }
 0x1d7   : > { %v666_v45 = vmax.f32 %v612_v41, 0.0 }
 0x1d8   : > { %v664_v47 = vmax.f32 %v604_v43, 0.0 }
 0x1d9   : > { %v680_v48 = vpack.c.bf16 %v666_v45, %v665_v44 }
 0x1da   : > { %v679_v49 = vpack.c.bf16 %v664_v47, %v663_v46  ;;  %v2242_v50 = vpop.f32.mrb[4].mxu1 }
 0x1db   : > { %v625_v51 = vadd.f32 %v2242_v50, %v2055_v35  ;;  %v616_v52 = vpop.f32.mrb[5].mxu1 }
 0x1dc   : > { %v617_v53 = vadd.f32 %v2055_v35, %v616_v52  ;;  %v2243_v54 = vpop.f32.mrb[6].mxu1  ;;  %2268 = vmatprep.mubr.bf16.mxu0 %v679_v49 }
 0x1dd   : > { %v628_v55 = vadd.f32 %v2243_v54, %v2055_v35  ;;  %v619_v56 = vpop.f32.mrb[7].mxu1  ;;  %2269 = vmatmul.mubr.bf16.vlgmr.msra.gmra.mrb[16].mxu0 %v680_v48  ;;  %v669_v58 = vmax.f32 %v625_v51, 0.0 }
 0x1de   : > { %v620_v57 = vadd.f32 %v2055_v35, %v619_v56  ;;  %v667_v60 = vmax.f32 %v617_v53, 0.0 }
 0x1df   : > { %v670_v59 = vmax.f32 %v628_v55, 0.0 }
 0x1e0   : > { %v668_v61 = vmax.f32 %v620_v57, 0.0 }
 0x1e1   : > { %v682_v62 = vpack.c.bf16 %v670_v59, %v669_v58 }
 0x1e2   : > { %v681_v63 = vpack.c.bf16 %v668_v61, %v667_v60  ;;  %v2246_v0 = vpop.f32.mrb[8].mxu1 }
 0x1e3   : > { %v641_v1 = vadd.f32 %v2246_v0, %v2055_v35  ;;  %v632_v2 = vpop.f32.mrb[9].mxu1 }
 0x1e4   : > { %v633_v3 = vadd.f32 %v2055_v35, %v632_v2  ;;  %v2247_v4 = vpop.f32.mrb[10].mxu1  ;;  %2272 = vmatprep.mubr.bf16.mxu0 %v681_v63 }
 0x1e5   : > { %v644_v5 = vadd.f32 %v2247_v4, %v2055_v35  ;;  %v635_v6 = vpop.f32.mrb[11].mxu1  ;;  %2273 = vmatmul.mubr.bf16.gmra.mrb[20].mxu0 %v682_v62  ;;  %v673_v8 = vmax.f32 %v641_v1, 0.0 }
 0x1e6   : > { %v636_v7 = vadd.f32 %v2055_v35, %v635_v6  ;;  %v671_v10 = vmax.f32 %v633_v3, 0.0 }
 0x1e7   : > { %v674_v9 = vmax.f32 %v644_v5, 0.0 }
 0x1e8   : > { %v672_v11 = vmax.f32 %v636_v7, 0.0 }
 0x1e9   : > { %v684_v12 = vpack.c.bf16 %v674_v9, %v673_v8 }
 0x1ea   : > { %v683_v13 = vpack.c.bf16 %v672_v11, %v671_v10  ;;  %v2250_v14 = vpop.f32.mrb[12].mxu1 }
 0x1eb   : > { %v657_v15 = vadd.f32 %v2250_v14, %v2055_v35  ;;  %v648_v16 = vpop.f32.mrb[13].mxu1 }
 0x1ec   : > { %v649_v17 = vadd.f32 %v2055_v35, %v648_v16  ;;  %v2251_v18 = vpop.f32.mrb[14].mxu1  ;;  %2276 = vmatprep.mubr.bf16.mxu0 %v683_v13 }
 0x1ed   : > { %v660_v19 = vadd.f32 %v2251_v18, %v2055_v35  ;;  %v651_v20 = vpop.f32.mrb[15].mxu1  ;;  %2277 = vmatmul.mubr.bf16.gmra.mrb[24].mxu0 %v684_v12  ;;  %v677_v22 = vmax.f32 %v657_v15, 0.0  ;;  %v2812_v15 = vshrl.u32 %v838_v28, 7 }
 0x1ee   : > { %v652_v21 = vadd.f32 %v2055_v35, %v651_v20  ;;  %v675_v24 = vmax.f32 %v649_v17, 0.0  ;;  %v2816_v17 = vstv %s2043_s23  ;;  %s2477_s23 = scalar_lea.vmem %s2476_s22, 2048 }
 0x1ef   : > { %v678_v23 = vmax.f32 %v660_v19, 0.0  ;;  %v1020_v16 = vadd.s32 16, %v2812_v15  ;;  %v1021_v19 = vadd.s32 24, %v2812_v15  ;;  %v1035_v20 = vadd.s32 %v2816_v17, %v2812_v15  ;;  %p2479_p1 = scmp.lt.s32.totalorder %s2477_s23, %s2471_s20 }
 0x1f0   : > { %v676_v25 = vmax.f32 %v652_v21, 0.0  ;;  %v1019_v21 = vadd.s32 8, %v2812_v15 }
 0x1f1   : > { %v686_v26 = vpack.c.bf16 %v678_v23, %v677_v22  ;;  %v1037_v18 = vadd.s32 %v2816_v17, %v1020_v16  ;;  %v1038_v23 = vadd.s32 %v2816_v17, %v1021_v19  ;;  %p2480_p2 = por %p2479_p1, %p2478_p0 }
 0x1f2   : > { %v685_v27 = vpack.c.bf16 %v676_v25, %v675_v24  ;;  %v1024_v24 = vadd.s32 48, %v2812_v15  ;;  %v1025_v25 = vadd.s32 56, %v2812_v15  ;;  %v1036_v28 = vadd.s32 %v2816_v17, %v1019_v21 }
 0x1f3   : > { %v1053_v22 = vmul.u32 128, %v1037_v18  ;;  %v1031_v18 = vadd.s32 104, %v2812_v15  ;;  %p2481_p3 = pnand %p2480_p2, %p2474_p13 }
 0x1f4   : > { %2280 = vmatprep.mubr.bf16.mxu0 %v685_v27  ;;  %v1051_v27 = vmul.u32 128, %v1035_v20 }
 0x1f5   : > { %2281 = vmatmul.mubr.bf16.gmra.mrb[28].mxu0 %v686_v26  ;;  %v1022_v26 = vadd.s32 32, %v2812_v15 }
 0x2b0   : > { %v2270_v31 = vpop.f32.mrb[16].mxu0 }
 0x2b1   : > { %v784_v32 = vadd.f32 %v2270_v31, %v2064_v30  ;;  %v775_v33 = vpop.f32.mrb[17].mxu0  ;;  %v1069_v31 = vadd.s32 %v1053_v22, %v2725_v29  ;;  %v1032_v22 = vadd.s32 112, %v2812_v15 }
 0x2b2   : > { %v776_v34 = vadd.f32 %v2064_v30, %v775_v33  ;;  %v2271_v35 = vpop.f32.mrb[18].mxu0  ;;  %v1041_v33 = vadd.s32 %v2816_v17, %v1024_v24 }
 0x2b3   : > { %v2733_v36 = vsel %vm840_vm1, %v784_v32, -1e+30  ;;  %v787_v37 = vadd.f32 %v2271_v35, %v2064_v30  ;;  %v778_v38 = vpop.f32.mrb[19].mxu0  ;;  %v1054_v32 = vmul.u32 128, %v1038_v23  ;;  %v1042_v35 = vadd.s32 %v2816_v17, %v1025_v25 }
 0x2b4   : > { %v2737_v39 = vsel %vm840_vm1, %v776_v34, -1e+30  ;;  %v779_v40 = vadd.f32 %v2064_v30, %v778_v38  ;;  %861 = vmax.xlane.f32.xlu1 %v2733_v36  ;;  %v1028_v34 = vadd.s32 80, %v2812_v15  ;;  %v1039_v38 = vadd.s32 %v2816_v17, %v1022_v26 }
 0x2b5   : > { %857 = vmax.xlane.f32.xlu0 %v2737_v39  ;;  %v2743_v41 = vsel %vm840_vm1, %v787_v37, -1e+30  ;;  %v1029_v37 = vadd.s32 88, %v2812_v15 }
 0x2b6   : > { %v2747_v42 = vsel %vm840_vm1, %v779_v40, -1e+30  ;;  %v1067_v40 = vadd.s32 %v1051_v27, %v2725_v29 }
 0x2b8   : > { %863 = vmax.xlane.f32.xlu1 %v2743_v41  ;;  %v2274_v43 = vpop.f32.mrb[20].mxu0 }
 0x2b9   : > { %v800_v44 = vadd.f32 %v2274_v43, %v2064_v30  ;;  %v791_v45 = vpop.f32.mrb[21].mxu0  ;;  %859 = vmax.xlane.f32.xlu0 %v2747_v42  ;;  %v1052_v43 = vmul.u32 128, %v1036_v28 }
 0x2ba   : > { %v2275_v46 = vpop.f32.mrb[22].mxu0  ;;  %v792_v50 = vadd.f32 %v2064_v30, %v791_v45  ;;  %v1085_v45 = vmul.u32 2654435769, %v1069_v31 }
 0x2bb   : > { %v2753_v47 = vsel %vm840_vm1, %v800_v44, -1e+30  ;;  %v803_v48 = vadd.f32 %v2275_v46, %v2064_v30  ;;  %v794_v49 = vpop.f32.mrb[23].mxu0  ;;  %v1070_v46 = vadd.s32 %v1054_v32, %v2725_v29 }
 0x2bc   : > { %3733 = vst [vmem:[#allocation7_spill] sm:$0xff] %v2753_v47  ;;  %v795_v52 = vadd.f32 %v2064_v30, %v794_v49  ;;  %v2763_v53 = vsel %vm840_vm1, %v792_v50, -1e+30  ;;  %v1045_v49 = vadd.s32 %v2816_v17, %v1028_v34  ;;  %v2839_v50 = vstv %s1099_s25 }
 0x2bd   : > { %v2757_v51 = vsel %vm840_vm1, %v803_v48, -1e+30  ;;  %869 = vmax.xlane.f32.xlu0 %v2753_v47  ;;  %3735 = vst [vmem:[#allocation9_spill] sm:$0xff] %v2763_v53  ;;  %v1057_v48 = vmul.u32 128, %v1041_v33  ;;  %v1048_v34 = vadd.s32 %v2816_v17, %v1031_v18 }
 0x2be   : > { %3734 = vst [vmem:[#allocation8_spill] sm:$0xff] %v2757_v51  ;;  %871 = vmax.xlane.f32.xlu1 %v2757_v51  ;;  %v2767_v55 = vsel %vm840_vm1, %v795_v52, -1e+30  ;;  %v1058_v52 = vmul.u32 128, %v1042_v35 }
 0x2bf   : > { %3736 = vst [vmem:[#allocation10_spill] sm:$0xff] %v2767_v55 }
 0x2c0   : > { %v2278_v54 = vpop.f32.mrb[24].mxu0 }
 0x2c1   : > { %v816_v56 = vadd.f32 %v2278_v54, %v2064_v30  ;;  %v807_v57 = vpop.f32.mrb[25].mxu0  ;;  %865 = vmax.xlane.f32.xlu0 %v2763_v53  ;;  %v1046_v54 = vadd.s32 %v2816_v17, %v1029_v37 }
 0x2c2   : > { %v2279_v58 = vpop.f32.mrb[26].mxu0  ;;  %867 = vmax.xlane.f32.xlu1 %v2767_v55  ;;  %v808_v62 = vadd.f32 %v2064_v30, %v807_v57  ;;  %v1055_v57 = vmul.u32 128, %v1039_v38 }
 0x2c3   : > { %v2773_v59 = vsel %vm840_vm1, %v816_v56, -1e+30  ;;  %v819_v60 = vadd.f32 %v2279_v58, %v2064_v30  ;;  %v810_v61 = vpop.f32.mrb[27].mxu0  ;;  %v1026_v56 = vadd.s32 64, %v2812_v15  ;;  %v1027_v58 = vadd.s32 72, %v2812_v15 }
 0x2c4   : > { %3737 = vst [vmem:[#allocation11_spill] sm:$0xff] %v2773_v59  ;;  %v811_v0 = vadd.f32 %v2064_v30, %v810_v61  ;;  %v2783_v1 = vsel %vm840_vm1, %v808_v62, -1e+30  ;;  %v1068_v61 = vadd.s32 %v1052_v43, %v2725_v29 }
 0x2c5   : > { %v2777_v63 = vsel %vm840_vm1, %v819_v60, -1e+30  ;;  %877 = vmax.xlane.f32.xlu0 %v2773_v59  ;;  %3739 = vst [vmem:[#allocation13_spill] sm:$0xff] %v2783_v1  ;;  %v1083_v60 = vmul.u32 2654435769, %v1067_v40  ;;  %v1044_v16 = vadd.s32 %v2816_v17, %v1027_v58  ;;  %v1049_v40 = vadd.s32 %v2816_v17, %v1032_v22 }
 0x2c6   : > { %3738 = vst [vmem:[#allocation12_spill] sm:$0xff] %v2777_v63  ;;  %879 = vmax.xlane.f32.xlu1 %v2777_v63  ;;  %v2787_v3 = vsel %vm840_vm1, %v811_v0, -1e+30  ;;  %v1103_v0 = vadd.s32 %v2839_v50, %v1085_v45  ;;  %v1084_v20 = vmul.u32 2654435769, %v1068_v61  ;;  %v1064_v58 = vmul.u32 128, %v1048_v34 }
 0x2c7   : > { %3740 = vst [vmem:[#allocation14_spill] sm:$0xff] %v2787_v3  ;;  %v1101_v19 = vadd.s32 %v2839_v50, %v1083_v60  ;;  %v1060_v33 = vmul.u32 128, %v1044_v16 }
 0x2c8   : > { %v2282_v2 = vpop.f32.mrb[28].mxu0  ;;  %v1119_v23 = vshrl.u32 %v1103_v0, 16  ;;  %v1102_v37 = vadd.s32 %v2839_v50, %v1084_v20  ;;  %v1080_v20 = vadd.s32 %v1064_v58, %v2725_v29 }
 0x2c9   : > { %v823_v4 = vpop.f32.mrb[29].mxu0  ;;  %873 = vmax.xlane.f32.xlu0 %v2783_v1  ;;  %v832_v8 = vadd.f32 %v2282_v2, %v2064_v30  ;;  %v1086_v2 = vmul.u32 2654435769, %v1070_v46  ;;  %v1117_v35 = vshrl.u32 %v1101_v19, 16 }
 0x2ca   : > { %v824_v5 = vadd.f32 %v2064_v30, %v823_v4  ;;  %v2283_v6 = vpop.f32.mrb[30].mxu0  ;;  %875 = vmax.xlane.f32.xlu1 %v2787_v3  ;;  %v1073_v4 = vadd.s32 %v1057_v48, %v2725_v29  ;;  %v1135_v43 = vxor.u32 %v1119_v23, %v1103_v0  ;;  %v1118_v61 = vshrl.u32 %v1102_v37, 16 }
 0x2cb   : > { %v826_v7 = vpop.f32.mrb[31].mxu0  ;;  %v835_v11 = vadd.f32 %v2283_v6, %v2064_v30  ;;  %v2803_v13 = vsel %vm840_vm1, %v832_v8, -1e+30  ;;  %v1074_v6 = vadd.s32 %v1058_v52, %v2725_v29  ;;  %v1043_v8 = vadd.s32 %v2816_v17, %v1026_v56 }
 0x2cc   : > { %v2793_v9 = vsel %vm840_vm1, %v824_v5, -1e+30  ;;  %v827_v10 = vadd.f32 %v2064_v30, %v826_v7  ;;  %3743 = vst [vmem:[#allocation17_spill] sm:$0xff] %v2803_v13  ;;  %v1023_v30 = vadd.s32 40, %v2812_v15  ;;  %v1061_v5 = vmul.u32 128, %v1045_v49 }
 0x2cd   : > { %3741 = vst [vmem:[#allocation15_spill] sm:$0xff] %v2793_v9  ;;  %881 = vmax.xlane.f32.xlu0 %v2793_v9  ;;  %v2808_v14 = vsel %vm840_vm1, %v835_v11, -1e+30  ;;  %v1062_v7 = vmul.u32 128, %v1046_v54  ;;  %v1071_v11 = vadd.s32 %v1055_v57, %v2725_v29  ;;  %v1104_v24 = vadd.s32 %v2839_v50, %v1086_v2 }
 0x2ce   : > { %v2798_v12 = vsel %vm840_vm1, %v827_v10, -1e+30  ;;  %3744 = vst [vmem:[#allocation18_spill] sm:$0xff] %v2808_v14  ;;  %v1040_v44 = vadd.s32 %v2816_v17, %v1023_v30  ;;  %v1030_v10 = vadd.s32 96, %v2812_v15  ;;  %v1089_v25 = vmul.u32 2654435769, %v1073_v4 }
 0x2cf   : > { %3742 = vst [vmem:[#allocation16_spill] sm:$0xff] %v2798_v12  ;;  %883 = vmax.xlane.f32.xlu1 %v2798_v12  ;;  %v1077_v26 = vadd.s32 %v1061_v5, %v2725_v29  ;;  %v1090_v27 = vmul.u32 2654435769, %v1074_v6  ;;  %v1078_v28 = vadd.s32 %v1062_v7, %v2725_v29  ;;  %v1059_v30 = vmul.u32 128, %v1043_v8 }
 0x2d0   : > { %v1056_v62 = vmul.u32 128, %v1040_v44  ;;  %v1047_v31 = vadd.s32 %v2816_v17, %v1030_v10  ;;  %v1087_v32 = vmul.u32 2654435769, %v1071_v11  ;;  %v1120_v44 = vshrl.u32 %v1104_v24, 16 }
 0x2d1   : > { %885 = vmax.xlane.f32.xlu0 %v2803_v13  ;;  %v1107_v45 = vadd.s32 %v2839_v50, %v1089_v25  ;;  %v1093_v46 = vmul.u32 2654435769, %v1077_v26  ;;  %v1108_v48 = vadd.s32 %v2839_v50, %v1090_v27  ;;  %v1094_v49 = vmul.u32 2654435769, %v1078_v28 }
 0x2d2   : > { %v1072_v21 = vadd.s32 %v1056_v62, %v2725_v29  ;;  %v1075_v52 = vadd.s32 %v1059_v30, %v2725_v29  ;;  %v1063_v54 = vmul.u32 128, %v1047_v31  ;;  %v1105_v56 = vadd.s32 %v2839_v50, %v1087_v32 }
 0x2d3   : > { %887 = vmax.xlane.f32.xlu1 %v2808_v14  ;;  %v1076_v57 = vadd.s32 %v1060_v33, %v2725_v29  ;;  %v1133_v60 = vxor.u32 %v1117_v35, %v1101_v19  ;;  %v1065_v0 = vmul.u32 128, %v1049_v40  ;;  %v1151_v2 = vmul.u32 2146121005, %v1135_v43 }
 0x2d4   : > { %v1088_v38 = vmul.u32 2654435769, %v1072_v21  ;;  %v1136_v4 = vxor.u32 %v1120_v44, %v1104_v24  ;;  %v1123_v5 = vshrl.u32 %v1107_v45, 16  ;;  %v1111_v6 = vadd.s32 %v2839_v50, %v1093_v46 }
 0x2d5   : > { %v1124_v7 = vshrl.u32 %v1108_v48, 16  ;;  %v1112_v8 = vadd.s32 %v2839_v50, %v1094_v49  ;;  %v1091_v10 = vmul.u32 2654435769, %v1075_v52  ;;  %v1079_v11 = vadd.s32 %v1063_v54, %v2725_v29 }
 0x2d6   : > { %v1106_v62 = vadd.s32 %v2839_v50, %v1088_v38  ;;  %v1121_v16 = vshrl.u32 %v1105_v56, 16  ;;  %v1092_v18 = vmul.u32 2654435769, %v1076_v57  ;;  %v1033_v19 = vadd.s32 120, %v2812_v15 }
 0x2d7   : > { %v1149_v21 = vmul.u32 2146121005, %v1133_v60  ;;  %v1134_v22 = vxor.u32 %v1118_v61, %v1102_v37  ;;  %v1081_v24 = vadd.s32 %v1065_v0, %v2725_v29  ;;  %v1167_v25 = vshrl.u32 %v1151_v2, 15 }
 0x2d8   : > { %v1122_v23 = vshrl.u32 %v1106_v62, 16  ;;  %v1152_v26 = vmul.u32 2146121005, %v1136_v4  ;;  %v1139_v27 = vxor.u32 %v1123_v5, %v1107_v45  ;;  %v1127_v28 = vshrl.u32 %v1111_v6, 16 }
 0x2d9   : > { %v1140_v30 = vxor.u32 %v1124_v7, %v1108_v48  ;;  %v1128_v31 = vshrl.u32 %v1112_v8, 16  ;;  %v1109_v32 = vadd.s32 %v2839_v50, %v1091_v10  ;;  %v1095_v33 = vmul.u32 2654435769, %v1079_v11 }
 0x2da   : > { %v1137_v34 = vxor.u32 %v1121_v16, %v1105_v56  ;;  %v1110_v35 = vadd.s32 %v2839_v50, %v1092_v18  ;;  %v1096_v38 = vmul.u32 2654435769, %v1080_v20  ;;  %v1050_v15 = vadd.s32 %v2816_v17, %v1033_v19 }
 0x2db   : > { %v1165_v40 = vshrl.u32 %v1149_v21, 15  ;;  %v1150_v37 = vmul.u32 2146121005, %v1134_v22  ;;  %v1138_v43 = vxor.u32 %v1122_v23, %v1106_v62  ;;  %v1097_v44 = vmul.u32 2654435769, %v1081_v24 }
 0x2dc   : > { %v1183_v46 = vxor.u32 %v1167_v25, %v1151_v2  ;;  %v1168_v49 = vshrl.u32 %v1152_v26, 15  ;;  %v1155_v52 = vmul.u32 2146121005, %v1139_v27  ;;  %v1143_v45 = vxor.u32 %v1127_v28, %v1111_v6 }
 0x2dd   : > { %v1156_v54 = vmul.u32 2146121005, %v1140_v30  ;;  %v1144_v48 = vxor.u32 %v1128_v31, %v1112_v8  ;;  %v1125_v57 = vshrl.u32 %v1109_v32, 16  ;;  %v1113_v58 = vadd.s32 %v2839_v50, %v1095_v33 }
 0x2de   : > { %v1153_v60 = vmul.u32 2146121005, %v1137_v34  ;;  %v1126_v56 = vshrl.u32 %v1110_v35, 16  ;;  %v1114_v61 = vadd.s32 %v2839_v50, %v1096_v38  ;;  %v1066_v0 = vmul.u32 128, %v1050_v15 }
 0x2df   : > { %v1181_v4 = vxor.u32 %v1165_v40, %v1149_v21  ;;  %v1166_v17 = vshrl.u32 %v1150_v37, 15  ;;  %v1154_v5 = vmul.u32 2146121005, %v1138_v43  ;;  %v1115_v62 = vadd.s32 %v2839_v50, %v1097_v44 }
 0x2e0   : > { %v1199_v7 = vmul.u32 2221713035, %v1183_v46  ;;  %v1184_v2 = vxor.u32 %v1168_v49, %v1152_v26  ;;  %v1171_v10 = vshrl.u32 %v1155_v52, 15  ;;  %v1159_v11 = vmul.u32 2146121005, %v1143_v45 }
 0x2e1   : > { %v1172_v6 = vshrl.u32 %v1156_v54, 15  ;;  %v1160_v16 = vmul.u32 2146121005, %v1144_v48  ;;  %v1141_v8 = vxor.u32 %v1125_v57, %v1109_v32  ;;  %v1129_v18 = vshrl.u32 %v1113_v58, 16 }
 0x2e2   : > { %v1169_v20 = vshrl.u32 %v1153_v60, 15  ;;  %v1142_v19 = vxor.u32 %v1126_v56, %v1110_v35  ;;  %v1130_v22 = vshrl.u32 %v1114_v61, 16  ;;  %v1082_v23 = vadd.s32 %v1066_v0, %v2725_v29 }
 0x2e3   : > { %v1197_v24 = vmul.u32 2221713035, %v1181_v4  ;;  %v1182_v25 = vxor.u32 %v1166_v17, %v1150_v37  ;;  %v1170_v21 = vshrl.u32 %v1154_v5, 15  ;;  %v1131_v27 = vshrl.u32 %v1115_v62, 16 }
 0x2e4   : > { %v1215_v28 = vshrl.u32 %v1199_v7, 16  ;;  %v1200_v30 = vmul.u32 2221713035, %v1184_v2  ;;  %v1187_v31 = vxor.u32 %v1171_v10, %v1155_v52  ;;  %v1175_v33 = vshrl.u32 %v1159_v11, 15 }
 0x2e5   : > { %v1188_v26 = vxor.u32 %v1172_v6, %v1156_v54  ;;  %v1176_v34 = vshrl.u32 %v1160_v16, 15  ;;  %v1157_v38 = vmul.u32 2146121005, %v1141_v8  ;;  %v1145_v15 = vxor.u32 %v1129_v18, %v1113_v58 }
 0x2e6   : > { %v1185_v40 = vxor.u32 %v1169_v20, %v1153_v60  ;;  %v1158_v32 = vmul.u32 2146121005, %v1142_v19  ;;  %v1146_v43 = vxor.u32 %v1130_v22, %v1114_v61  ;;  %v1098_v44 = vmul.u32 2654435769, %v1082_v23 }
 0x2e7   : > { %v1213_v35 = vshrl.u32 %v1197_v24, 16  ;;  %v1198_v46 = vmul.u32 2221713035, %v1182_v25  ;;  %v1186_v49 = vxor.u32 %v1170_v21, %v1154_v5  ;;  %v1147_v45 = vxor.u32 %v1131_v27, %v1115_v62 }
 0x2e8   : > { %v1231_v48 = vxor.u32 %v1215_v28, %v1199_v7  ;;  %v1216_v37 = vshrl.u32 %v1200_v30, 16  ;;  %v1203_v57 = vmul.u32 2221713035, %v1187_v31  ;;  %v1191_v56 = vxor.u32 %v1175_v33, %v1159_v11 }
 0x2e9   : > { %v1204_v0 = vmul.u32 2221713035, %v1188_v26  ;;  %v1192_v4 = vxor.u32 %v1176_v34, %v1160_v16  ;;  %v1173_v52 = vshrl.u32 %v1157_v38, 15  ;;  %v1161_v17 = vmul.u32 2146121005, %v1145_v15 }
 0x2ea   : > { %v1201_v54 = vmul.u32 2221713035, %v1185_v40  ;;  %v1174_v2 = vshrl.u32 %v1158_v32, 15  ;;  %v1162_v10 = vmul.u32 2146121005, %v1146_v43  ;;  %v1116_v58 = vadd.s32 %v2839_v50, %v1098_v44 }
 0x2eb   : > { %v1229_v60 = vxor.u32 %v1213_v35, %v1197_v24  ;;  %v1214_v61 = vshrl.u32 %v1198_v46, 16  ;;  %v1202_v6 = vmul.u32 2221713035, %v1186_v49  ;;  %v1163_v8 = vmul.u32 2146121005, %v1147_v45 }
 0x2ec   : > { %v1247_v18 = vshrl.u32 %v1231_v48, 8  ;;  %v1232_v5 = vxor.u32 %v1216_v37, %v1200_v30  ;;  %v1219_v62 = vshrl.u32 %v1203_v57, 16  ;;  %v1207_v7 = vmul.u32 2221713035, %v1191_v56 }
 0x2ed   : > { %v1220_v20 = vshrl.u32 %v1204_v0, 16  ;;  %v1208_v19 = vmul.u32 2221713035, %v1192_v4  ;;  %v1189_v11 = vxor.u32 %v1173_v52, %v1157_v38  ;;  %v1177_v22 = vshrl.u32 %v1161_v17, 15 }
 0x2ee   : > { %v1217_v16 = vshrl.u32 %v1201_v54, 16  ;;  %v1190_v23 = vxor.u32 %v1174_v2, %v1158_v32  ;;  %v1178_v25 = vshrl.u32 %v1162_v10, 15  ;;  %v1132_v21 = vshrl.u32 %v1116_v58, 16 }
 0x2ef   : > { %v1245_v27 = vshrl.u32 %v1229_v60, 8  ;;  %v1230_v28 = vxor.u32 %v1214_v61, %v1198_v46  ;;  %v1218_v31 = vshrl.u32 %v1202_v6, 16  ;;  %v1179_v50 = vshrl.u32 %v1163_v8, 15 }
 0x2f0   : > { %v1263_v24 = vcvt.s32.f32 %v1247_v18  ;;  %v1248_v33 = vshrl.u32 %v1232_v5, 8  ;;  %v1235_v26 = vxor.u32 %v1219_v62, %v1203_v57  ;;  %v1223_v34 = vshrl.u32 %v1207_v7, 16 }
 0x2f1   : > { %v1236_v15 = vxor.u32 %v1220_v20, %v1204_v0  ;;  %v1224_v30 = vshrl.u32 %v1208_v19, 16  ;;  %v1205_v40 = vmul.u32 2221713035, %v1189_v11  ;;  %v1193_v43 = vxor.u32 %v1177_v22, %v1161_v17 }
 0x2f2   : > { %v1233_v44 = vxor.u32 %v1217_v16, %v1201_v54  ;;  %v1206_v35 = vmul.u32 2221713035, %v1190_v23  ;;  %v1194_v38 = vxor.u32 %v1178_v25, %v1162_v10  ;;  %v1148_v49 = vxor.u32 %v1132_v21, %v1116_v58 }
 0x2f3   : > { %v1261_v45 = vcvt.s32.f32 %v1245_v27  ;;  %v1246_v32 = vshrl.u32 %v1230_v28, 8  ;;  %v1234_v48 = vxor.u32 %v1218_v31, %v1202_v6  ;;  %v1195_v37 = vxor.u32 %v1179_v50, %v1163_v8 }
 0x2f4   : > { %v1279_v56 = vadd.f32 0.5, %v1263_v24  ;;  %v1264_v46 = vcvt.s32.f32 %v1248_v33  ;;  %v1251_v4 = vshrl.u32 %v1235_v26, 8  ;;  %v1239_v52 = vxor.u32 %v1223_v34, %v1207_v7 }
 0x2f5   : > { %v1252_v2 = vshrl.u32 %v1236_v15, 8  ;;  %v1240_v60 = vxor.u32 %v1224_v30, %v1208_v19  ;;  %v1221_v57 = vshrl.u32 %v1205_v40, 16  ;;  %v1209_v61 = vmul.u32 2221713035, %v1193_v43 }
 0x2f6   : > { %v1249_v0 = vshrl.u32 %v1233_v44, 8  ;;  %v1222_v18 = vshrl.u32 %v1206_v35, 16  ;;  %v1210_v5 = vmul.u32 2221713035, %v1194_v38  ;;  %v1164_v17 = vmul.u32 2146121005, %v1148_v49 }
 0x2f7   : > { %v1277_v54 = vadd.f32 0.5, %v1261_v45  ;;  %v1262_v62 = vcvt.s32.f32 %v1246_v32  ;;  %v1250_v10 = vshrl.u32 %v1234_v48, 8  ;;  %v1211_v58 = vmul.u32 2221713035, %v1195_v37 }
 0x2f8   : > { %v1295_v20 = vmul.f32 5.9604645e-08, %v1279_v56  ;;  %v1280_v11 = vadd.f32 0.5, %v1264_v46  ;;  %v1267_v6 = vcvt.s32.f32 %v1251_v4  ;;  %v1255_v8 = vshrl.u32 %v1239_v52, 8 }
 0x2f9   : > { %v1268_v22 = vcvt.s32.f32 %v1252_v2  ;;  %v1256_v16 = vshrl.u32 %v1240_v60, 8  ;;  %v1237_v23 = vxor.u32 %v1221_v57, %v1205_v40  ;;  %v1225_v7 = vshrl.u32 %v1209_v61, 16 }
 0x2fa   : > { %v1265_v25 = vcvt.s32.f32 %v1249_v0  ;;  %v1238_v19 = vxor.u32 %v1222_v18, %v1206_v35  ;;  %v1226_v21 = vshrl.u32 %v1210_v5, 16  ;;  %v1180_v27 = vshrl.u32 %v1164_v17, 15 }
 0x2fb   : > { %v1293_v28 = vmul.f32 5.9604645e-08, %v1277_v54  ;;  %v1278_v31 = vadd.f32 0.5, %v1262_v62  ;;  %v1266_v50 = vcvt.s32.f32 %v1250_v10  ;;  %v1227_v24 = vshrl.u32 %v1211_v58, 16 }
 0x2fc   : > { %2343 = vlog2.f32 %v1295_v20  ;;  %v1296_v33 = vmul.f32 5.9604645e-08, %v1280_v11  ;;  %v1283_v26 = vadd.f32 0.5, %v1267_v6  ;;  %v1271_v34 = vcvt.s32.f32 %v1255_v8 }
 0x2fd   : > { %v1284_v15 = vadd.f32 0.5, %v1268_v22  ;;  %v1272_v30 = vcvt.s32.f32 %v1256_v16  ;;  %v1253_v43 = vshrl.u32 %v1237_v23, 8  ;;  %v1241_v44 = vxor.u32 %v1225_v7, %v1209_v61 }
 0x2fe   : > { %v1281_v38 = vadd.f32 0.5, %v1265_v25  ;;  %v1254_v49 = vshrl.u32 %v1238_v19, 8  ;;  %v1242_v40 = vxor.u32 %v1226_v21, %v1210_v5  ;;  %v1196_v45 = vxor.u32 %v1180_v27, %v1164_v17 }
 0x2ff   : > { %2345 = vlog2.f32 %v1293_v28  ;;  %v1294_v35 = vmul.f32 5.9604645e-08, %v1278_v31  ;;  %v1282_v32 = vadd.f32 0.5, %v1266_v50  ;;  %v1243_v48 = vxor.u32 %v1227_v24, %v1211_v58 }
 0x300   : > { %2347 = vlog2.f32 %v1296_v33  ;;  %v1299_v37 = vmul.f32 5.9604645e-08, %v1283_v26  ;;  %v1287_v56 = vadd.f32 0.5, %v1271_v34  ;;  %v1300_v46 = vmul.f32 5.9604645e-08, %v1284_v15 }
 0x301   : > { %v1288_v4 = vadd.f32 0.5, %v1272_v30  ;;  %v1269_v52 = vcvt.s32.f32 %v1253_v43  ;;  %v1257_v2 = vshrl.u32 %v1241_v44, 8  ;;  %v1297_v60 = vmul.f32 5.9604645e-08, %v1281_v38 }
 0x302   : > { %v1270_v57 = vcvt.s32.f32 %v1254_v49  ;;  %v1258_v0 = vshrl.u32 %v1242_v40, 8  ;;  %v1212_v18 = vmul.u32 2221713035, %v1196_v45  ;;  %2349 = vlog2.f32 %v1294_v35 }
 0x303   : > { %v1298_v61 = vmul.f32 5.9604645e-08, %v1282_v32  ;;  %v1259_v54 = vshrl.u32 %v1243_v48, 8  ;;  %2351 = vlog2.f32 %v1299_v37  ;;  %v1303_v5 = vmul.f32 5.9604645e-08, %v1287_v56 }
 0x304   : > { %2353 = vlog2.f32 %v1300_v46  ;;  %v1304_v17 = vmul.f32 5.9604645e-08, %v1288_v4  ;;  %v1285_v62 = vadd.f32 0.5, %v1269_v52  ;;  %v1273_v10 = vcvt.s32.f32 %v1257_v2 }
 0x305   : > { %2355 = vlog2.f32 %v1297_v60  ;;  %v1286_v11 = vadd.f32 0.5, %v1270_v57  ;;  %v1274_v6 = vcvt.s32.f32 %v1258_v0  ;;  %v1228_v8 = vshrl.u32 %v1212_v18, 16 }
 0x306   : > { %v2883_v58 = vpop.eup %2343  ;;  %2357 = vlog2.f32 %v1298_v61  ;;  %v1275_v23 = vcvt.s32.f32 %v1259_v54  ;;  %v1301_v21 = vmul.f32 5.9604645e-08, %v1285_v62  ;;  %v1289_v27 = vadd.f32 0.5, %v1273_v10 }
 0x307   : > { %2359 = vlog2.f32 %v1303_v5  ;;  %v1302_v24 = vmul.f32 5.9604645e-08, %v1286_v11  ;;  %v1290_v33 = vadd.f32 0.5, %v1274_v6  ;;  %v1244_v26 = vxor.u32 %v1228_v8, %v1212_v18 }
 0x308   : > { %2361 = vlog2.f32 %v1304_v17  ;;  %v1291_v30 = vadd.f32 0.5, %v1275_v23  ;;  %v1305_v49 = vmul.f32 5.9604645e-08, %v1289_v27 }
 0x309   : > { %v2893_v25 = vpop.eup %2345  ;;  %v1306_v35 = vmul.f32 5.9604645e-08, %v1290_v33  ;;  %v1260_v32 = vshrl.u32 %v1244_v26, 8  ;;  %v1314_v26 = vmul.f32 0.6931472, %v2883_v58 }
 0x30a   : > { %v2895_v28 = vpop.eup %2347  ;;  %v1307_v56 = vmul.f32 5.9604645e-08, %v1291_v30 }
 0x30b   : > { %v1276_v18 = vcvt.s32.f32 %v1260_v32 }
 0x30c   : > { %v2905_v44 = vpop.eup %2349 }
 0x30d   : > { %v2907_v40 = vpop.eup %2351 }
 0x30e   : > { %v2909_v48 = vpop.eup %2353 }
 0x30f   : > { %v2913_v46 = vpop.eup %2355 }
 0x310   : > { %v2919_v2 = vpop.eup %2357 }
 0x311   : > { %v2923_v57 = vpop.eup %2359 }
 0x312   : > { %v2925_v61 = vpop.eup %2361 }
 0x341   : > { %v2885_v20 = vpop.xlane.xlu1 %861 }
 0x342   : > { %v891_v22 = vsub.f32 %v2733_v36, %v2885_v20  ;;  %v2889_v16 = vpop.xlane.xlu0 %857 }
 0x343   : > { %v889_v7 = vsub.f32 %v2737_v39, %v2889_v16 }
 0x344   : > { %v909_v19 = vmul.f32 1.442695, %v891_v22  ;;  %v1292_v22 = vadd.f32 0.5, %v1276_v18  ;;  %v1316_v18 = vmul.f32 0.6931472, %v2895_v28 }
 0x345   : > { %v905_v31 = vmul.f32 1.442695, %v889_v7  ;;  %v2897_v50 = vpop.xlane.xlu1 %863 }
 0x346   : > { %2363 = vpow2.f32 %v909_v19  ;;  %v892_v34 = vsub.f32 %v2743_v41, %v2897_v50  ;;  %v2901_v15 = vpop.xlane.xlu0 %859 }
 0x347   : > { %2365 = vpow2.f32 %v905_v31  ;;  %v890_v43 = vsub.f32 %v2747_v42, %v2901_v15 }
 0x348   : > { %v911_v38 = vmul.f32 1.442695, %v892_v34  ;;  %2367 = vlog2.f32 %v1301_v21 }
 0x349   : > { %v907_v45 = vmul.f32 1.442695, %v890_v43  ;;  %2369 = vlog2.f32 %v1302_v24  ;;  %v1308_v43 = vmul.f32 5.9604645e-08, %v1292_v22 }
 0x34a   : > { %2371 = vpow2.f32 %v911_v38  ;;  %v2911_v37 = vpop.xlane.xlu0 %869 }
 0x34b   : > { %2373 = vpow2.f32 %v907_v45  ;;  %v895_v4 = vsub.f32 %v2753_v47, %v2911_v37  ;;  %v2917_v52 = vpop.xlane.xlu1 %871 }
 0x34c   : > { %3745 = vst [vmem:[#allocation19_spill] sm:$0xff] %v2917_v52  ;;  %v896_v60 = vsub.f32 %v2757_v51, %v2917_v52  ;;  %2375 = vlog2.f32 %v1305_v49 }
 0x34d   : > { %v917_v0 = vmul.f32 1.442695, %v895_v4  ;;  %2377 = vlog2.f32 %v1306_v35  ;;  %v1310_v35 = vmul.f32 0.6931472, %v2893_v25 }
 0x34e   : > { %v919_v54 = vmul.f32 1.442695, %v896_v60  ;;  %v2927_v5 = vpop.xlane.xlu0 %865  ;;  %2379 = vlog2.f32 %v1307_v56 }
 0x34f   : > { %2381 = vpow2.f32 %v917_v0  ;;  %v893_v17 = vsub.f32 %v2763_v53, %v2927_v5  ;;  %v2931_v62 = vpop.xlane.xlu1 %867  ;;  %v1343_v0 = vsub.f32 0.0, %v1314_v26  ;;  %v1341_v22 = vsub.f32 0.0, %v1310_v35 }
 0x350   : > { %3746 = vst [vmem:[#allocation20_spill] sm:$0xff] %v2931_v62  ;;  %v2933_v10 = vpop.eup %2363  ;;  %2383 = vpow2.f32 %v919_v54  ;;  %v894_v11 = vsub.f32 %v2767_v55, %v2931_v62 }
 0x351   : > { %v2937_v6 = vpop.eup %2365  ;;  %v913_v8 = vmul.f32 1.442695, %v893_v17  ;;  %2385 = vrcp.f32 %v2933_v10 }
 0x352   : > { %v2940_v23 = vpop.eup %2367  ;;  %v915_v7 = vmul.f32 1.442695, %v894_v11  ;;  %v2942_v19 = vpop.xlane.xlu0 %877  ;;  %2387 = vrcp.f32 %v2937_v6 }
 0x353   : > { %3747 = vst [vmem:[#allocation21_spill] sm:$0xff] %v2942_v19  ;;  %v2945_v21 = vpop.eup %2369  ;;  %2389 = vpow2.f32 %v913_v8  ;;  %v899_v27 = vsub.f32 %v2773_v59, %v2942_v19  ;;  %v2949_v31 = vpop.xlane.xlu1 %879 }
 0x354   : > { %3748 = vst [vmem:[#allocation22_spill] sm:$0xff] %v2949_v31  ;;  %v2951_v24 = vpop.eup %2371  ;;  %2391 = vpow2.f32 %v915_v7  ;;  %v900_v33 = vsub.f32 %v2777_v63, %v2949_v31  ;;  %v1312_v7 = vmul.f32 0.6931472, %v2905_v44 }
 0x355   : > { %v2956_v34 = vpop.eup %2373  ;;  %v925_v30 = vmul.f32 1.442695, %v899_v27  ;;  %2393 = vrcp.f32 %v2951_v24 }
 0x356   : > { %v2959_v38 = vpop.eup %2375  ;;  %v927_v49 = vmul.f32 1.442695, %v900_v33  ;;  %v2961_v45 = vpop.xlane.xlu0 %873  ;;  %2395 = vrcp.f32 %v2956_v34 }
 0x357   : > { %3749 = vst [vmem:[#allocation23_spill] sm:$0xff] %v2961_v45  ;;  %v2965_v32 = vpop.eup %2377  ;;  %2397 = vpow2.f32 %v925_v30  ;;  %v897_v58 = vsub.f32 %v2783_v1, %v2961_v45  ;;  %v2969_v56 = vpop.xlane.xlu1 %875 }
 0x358   : > { %3750 = vst [vmem:[#allocation24_spill] sm:$0xff] %v2969_v56  ;;  %v2971_v4 = vpop.eup %2379  ;;  %2399 = vpow2.f32 %v927_v49  ;;  %v898_v60 = vsub.f32 %v2787_v3, %v2969_v56  ;;  %v1322_v49 = vmul.f32 0.6931472, %v2907_v40 }
 0x359   : > { %v2976_v25 = vpop.eup %2381  ;;  %v921_v54 = vmul.f32 1.442695, %v897_v58  ;;  %2401 = vlog2.f32 %v1308_v43  ;;  %v1344_v43 = vsub.f32 0.0, %v1316_v18  ;;  %v1342_v18 = vsub.f32 0.0, %v1312_v7 }
 0x35a   : > { %v2978_v17 = vpop.eup %2383  ;;  %v923_v11 = vmul.f32 1.442695, %v898_v60  ;;  %v2980_v8 = vpop.xlane.xlu0 %881  ;;  %2403 = vrcp.f32 %v2976_v25  ;;  %v1347_v3 = vsub.f32 0.0, %v1322_v49 }
 0x35b   : > { %3751 = vst [vmem:[#allocation25_spill] sm:$0xff] %v2980_v8  ;;  %v2386_v27 = vpop.eup %2385  ;;  %2405 = vpow2.f32 %v921_v54  ;;  %v901_v33 = vsub.f32 %v2793_v9, %v2980_v8 }
 0x35c   : > { %v2388_v28 = vpop.eup %2387  ;;  %2407 = vpow2.f32 %v923_v11  ;;  %v2986_v26 = vpop.xlane.xlu1 %883  ;;  %v1362_v30 = vmul.f32 %v2386_v27, %v1343_v0 }
 0x35d   : > { %3752 = vst [vmem:[#allocation26_spill] sm:$0xff] %v2986_v26  ;;  %v2989_v58 = vpop.eup %2389  ;;  %v929_v35 = vmul.f32 1.442695, %v901_v33  ;;  %v902_v44 = vsub.f32 %v2798_v12, %v2986_v26  ;;  %2409 = vrcp.f32 %v2978_v17  ;;  %v1358_v0 = vmul.f32 %v2388_v28, %v1341_v22 }
 0x35e   : > { %v2994_v60 = vpop.eup %2391  ;;  %v2996_v54 = vpop.xlane.xlu0 %885  ;;  %v3000_v11 = vsel %vm840_vm1, %v1362_v30, inf  ;;  %2411 = vrcp.f32 %v2989_v58  ;;  %v1324_v30 = vmul.f32 0.6931472, %v2909_v48 }
 0x35f   : > { %3753 = vst [vmem:[#allocation27_spill] sm:$0xff] %v2996_v54  ;;  %v2394_v40 = vpop.eup %2393  ;;  %2413 = vpow2.f32 %v929_v35  ;;  %v931_v27 = vmul.f32 1.442695, %v902_v44  ;;  %v903_v33 = vsub.f32 %v2803_v13, %v2996_v54  ;;  %1409 = vmin.xlane.f32.xlu0 %v3000_v11  ;;  %v1318_v35 = vmul.f32 0.6931472, %v2913_v46 }
 0x360   : > { %v2396_v12 = vpop.eup %2395  ;;  %v3006_v9 = vpop.xlane.xlu1 %887  ;;  %v1364_v26 = vmul.f32 %v2394_v40, %v1344_v43  ;;  %2415 = vrcp.f32 %v2994_v60  ;;  %v3023_v48 = vsel %vm840_vm1, %v1358_v0, inf  ;;  %v1320_v46 = vmul.f32 0.6931472, %v2919_v2 }
 0x361   : > { %3754 = vst [vmem:[#allocation28_spill] sm:$0xff] %v3006_v9  ;;  %v3010_v22 = vpop.eup %2397  ;;  %2417 = vpow2.f32 %v931_v27  ;;  %v933_v7 = vmul.f32 1.442695, %v903_v33  ;;  %v904_v28 = vsub.f32 %v2808_v14, %v3006_v9  ;;  %v1360_v43 = vmul.f32 %v2396_v12, %v1342_v18 }
 0x362   : > { %v3015_v44 = vpop.eup %2399  ;;  %v3019_v13 = vsel %vm840_vm1, %v1364_v26, inf  ;;  %2419 = vrcp.f32 %v3010_v22  ;;  %v1348_v26 = vsub.f32 0.0, %v1324_v30  ;;  %v1345_v0 = vsub.f32 0.0, %v1318_v35 }
 0x363   : > { %v3026_v49 = vpop.eup %2401  ;;  %2421 = vpow2.f32 %v933_v7  ;;  %v935_v40 = vmul.f32 1.442695, %v904_v28  ;;  %1411 = vmin.xlane.f32.xlu1 %v3019_v13  ;;  %1405 = vmin.xlane.f32.xlu0 %v3023_v48  ;;  %v1330_v18 = vmul.f32 0.6931472, %v2923_v57  ;;  %v3039_v7 = vsel %vm840_vm1, %v1360_v43, inf }
 0x364   : > { %v2404_v27 = vpop.eup %2403  ;;  %2423 = vrcp.f32 %v3015_v44  ;;  %v1346_v28 = vsub.f32 0.0, %v1320_v46  ;;  %v1326_v9 = vmul.f32 0.6931472, %v2940_v23  ;;  %v1328_v46 = vmul.f32 0.6931472, %v2945_v21 }
 0x365   : > { %v3032_v33 = vpop.eup %2405  ;;  %2425 = vpow2.f32 %v935_v40  ;;  %v1370_v12 = vmul.f32 %v2404_v27, %v1347_v3  ;;  %v1332_v3 = vmul.f32 0.6931472, %v2925_v61  ;;  %v1351_v27 = vsub.f32 0.0, %v1330_v18 }
 0x366   : > { %v3035_v14 = vpop.eup %2407  ;;  %2427 = vrcp.f32 %v3032_v33 }
 0x367   : > { %v2410_v2 = vpop.eup %2409  ;;  %1407 = vmin.xlane.f32.xlu1 %v3039_v7  ;;  %v3045_v30 = vsel %vm840_vm1, %v1370_v12, inf  ;;  %2429 = vrcp.f32 %v3035_v14  ;;  %v1352_v18 = vsub.f32 0.0, %v1332_v3 }
 0x368   : > { %v2412_v57 = vpop.eup %2411  ;;  %1417 = vmin.xlane.f32.xlu0 %v3045_v30  ;;  %v1372_v35 = vmul.f32 %v2410_v2, %v1348_v26 }
 0x369   : > { %v3050_v43 = vpop.eup %2413  ;;  %v1366_v40 = vmul.f32 %v2412_v57, %v1345_v0  ;;  %v1349_v57 = vsub.f32 0.0, %v1326_v9  ;;  %v1336_v9 = vmul.f32 0.6931472, %v2965_v32 }
 0x36a   : > { %v2416_v54 = vpop.eup %2415  ;;  %v3055_v12 = vsel %vm840_vm1, %v1372_v35, inf  ;;  %2431 = vrcp.f32 %v3050_v43  ;;  %v1334_v35 = vmul.f32 0.6931472, %v2959_v38 }
 0x36b   : > { %v3059_v61 = vpop.eup %2417  ;;  %1419 = vmin.xlane.f32.xlu1 %v3055_v12  ;;  %v3064_v26 = vsel %vm840_vm1, %v1366_v40, inf  ;;  %v1368_v0 = vmul.f32 %v2416_v54, %v1346_v28  ;;  %v1350_v40 = vsub.f32 0.0, %v1328_v46 }
 0x36c   : > { %v2420_v23 = vpop.eup %2419  ;;  %1413 = vmin.xlane.f32.xlu0 %v3064_v26  ;;  %2433 = vrcp.f32 %v3059_v61 }
 0x36d   : > { %v3068_v2 = vpop.eup %2421  ;;  %v1378_v21 = vmul.f32 %v2420_v23, %v1351_v27  ;;  %v3073_v56 = vsel %vm840_vm1, %v1368_v0, inf  ;;  %v1353_v0 = vsub.f32 0.0, %v1334_v35  ;;  %v1338_v23 = vmul.f32 0.6931472, %v2971_v4 }
 0x36e   : > { %v2424_v8 = vpop.eup %2423  ;;  %2435 = vrcp.f32 %v3068_v2 }
 0x36f   : > { %v3076_v54 = vpop.eup %2425  ;;  %1415 = vmin.xlane.f32.xlu1 %v3073_v56  ;;  %v3081_v28 = vsel %vm840_vm1, %v1378_v21, inf  ;;  %v1380_v3 = vmul.f32 %v2424_v8, %v1352_v18  ;;  %v1354_v8 = vsub.f32 0.0, %v1336_v9  ;;  %v1340_v18 = vmul.f32 0.6931472, %v3026_v49 }
 0x370   : > { %v2428_v38 = vpop.eup %2427  ;;  %1425 = vmin.xlane.f32.xlu0 %v3081_v28  ;;  %2437 = vrcp.f32 %v3076_v54  ;;  %v1355_v35 = vsub.f32 0.0, %v1338_v23 }
 0x371   : > { %v2430_v27 = vpop.eup %2429  ;;  %v1374_v46 = vmul.f32 %v2428_v38, %v1349_v57  ;;  %v3089_v63 = vsel %vm840_vm1, %v1380_v3, inf  ;;  %v1356_v9 = vsub.f32 0.0, %v1340_v18 }
 0x372   : > { %v1376_v1 = vmul.f32 %v2430_v27, %v1350_v40 }
 0x373   : > { %1427 = vmin.xlane.f32.xlu1 %v3089_v63  ;;  %v3094_v32 = vsel %vm840_vm1, %v1374_v46, inf }
 0x374   : > { %v2432_v21 = vpop.eup %2431  ;;  %1421 = vmin.xlane.f32.xlu0 %v3094_v32  ;;  %v3100_v3 = vsel %vm840_vm1, %v1376_v1, inf }
 0x375   : > { %v1382_v57 = vmul.f32 %v2432_v21, %v1353_v0 }
 0x376   : > { %v2434_v4 = vpop.eup %2433 }
 0x377   : > { %1423 = vmin.xlane.f32.xlu1 %v3100_v3  ;;  %v3105_v40 = vsel %vm840_vm1, %v1382_v57, inf  ;;  %v1384_v38 = vmul.f32 %v2434_v4, %v1354_v8 }
 0x378   : > { %v2436_v27 = vpop.eup %2435  ;;  %1429 = vmin.xlane.f32.xlu0 %v3105_v40 }
 0x379   : > { %v3110_v49 = vsel %vm840_vm1, %v1384_v38, inf  ;;  %v1386_v46 = vmul.f32 %v2436_v27, %v1355_v35 }
 0x37a   : > { %v2438_v0 = vpop.eup %2437 }
 0x37b   : > { %1431 = vmin.xlane.f32.xlu1 %v3110_v49  ;;  %v3115_v1 = vsel %vm840_vm1, %v1386_v46, inf  ;;  %v1388_v23 = vmul.f32 %v2438_v0, %v1356_v9 }
 0x37c   : > { %1433 = vmin.xlane.f32.xlu0 %v3115_v1 }
 0x37d   : > { %v3120_v8 = vsel %vm840_vm1, %v1388_v23, inf }
 0x37f   : > { %1435 = vmin.xlane.f32.xlu1 %v3120_v8 }
 0x3ec   : > { %v1410_v18 = vpop.xlane.xlu0 %1409 }
 0x3ed   : > { %vm1439_vm2 = vcmp.le.f32.partialorder %v3000_v11, %v1410_v18 }
 0x3ee   : > { %v3125_v21 = vsel %vm1439_vm2, %v2725_v29, 128 }
 0x3ef   : > { %v1498_v57 = vshra.s32 %v3125_v21, 16 }
 0x3f0   : > { %v1412_v35 = vpop.xlane.xlu1 %1411  ;;  %v1406_v4 = vpop.xlane.xlu0 %1405 }
 0x3f1   : > { %vm1440_vm3 = vcmp.le.f32.partialorder %v3019_v13, %v1412_v35  ;;  %vm1437_vm4 = vcmp.le.f32.partialorder %v3023_v48, %v1406_v4  ;;  %v3130_v38 = vcvt.s32.f32 %v1498_v57 }
 0x3f2   : > { %v3133_v9 = vsel %vm1440_vm3, %v2725_v29, 128  ;;  %v3136_v27 = vsel %vm1437_vm4, %v2725_v29, 128 }
 0x3f3   : > { %1501 = vmin.xlane.f32.xlu0 %v3130_v38  ;;  %v1512_v11 = vshra.s32 %v3133_v9, 16  ;;  %v1470_v46 = vshra.s32 %v3136_v27, 16 }
 0x3f4   : > { %v1408_v0 = vpop.xlane.xlu1 %1407 }
 0x3f5   : > { %vm1438_vm5 = vcmp.le.f32.partialorder %v3039_v7, %v1408_v0  ;;  %v1418_v13 = vpop.xlane.xlu0 %1417  ;;  %v3142_v23 = vcvt.s32.f32 %v1512_v11  ;;  %v3144_v48 = vcvt.s32.f32 %v1470_v46 }
 0x3f6   : > { %v3147_v18 = vsel %vm1438_vm5, %v2725_v29, 128  ;;  %vm1443_vm6 = vcmp.le.f32.partialorder %v3045_v30, %v1418_v13 }
 0x3f7   : > { %v3151_v57 = vsel %vm1443_vm6, %v2725_v29, 128  ;;  %1515 = vmin.xlane.f32.xlu1 %v3142_v23  ;;  %1473 = vmin.xlane.f32.xlu0 %v3144_v48  ;;  %v1484_v35 = vshra.s32 %v3147_v18, 16 }
 0x3f8   : > { %v1420_v7 = vpop.xlane.xlu1 %1419  ;;  %v1554_v4 = vshra.s32 %v3151_v57, 16 }
 0x3f9   : > { %vm1444_vm7 = vcmp.le.f32.partialorder %v3055_v12, %v1420_v7  ;;  %v1414_v11 = vpop.xlane.xlu0 %1413  ;;  %v3158_v46 = vcvt.s32.f32 %v1484_v35 }
 0x3fa   : > { %v3161_v0 = vsel %vm1444_vm7, %v2725_v29, 128  ;;  %vm1441_vm8 = vcmp.le.f32.partialorder %v3064_v26, %v1414_v11  ;;  %v3164_v30 = vcvt.s32.f32 %v1554_v4 }
 0x3fb   : > { %v3167_v13 = vsel %vm1441_vm8, %v2725_v29, 128  ;;  %1487 = vmin.xlane.f32.xlu1 %v3158_v46  ;;  %v1568_v59 = vshra.s32 %v3161_v0, 16 }
 0x3fc   : > { %v1416_v31 = vpop.xlane.xlu1 %1415  ;;  %1557 = vmin.xlane.f32.xlu0 %v3164_v30  ;;  %v1526_v12 = vshra.s32 %v3167_v13, 16 }
 0x3fd   : > { %vm1442_vm9 = vcmp.le.f32.partialorder %v3073_v56, %v1416_v31  ;;  %v1426_v35 = vpop.xlane.xlu0 %1425  ;;  %v3174_v7 = vcvt.s32.f32 %v1568_v59 }
 0x3fe   : > { %v3177_v26 = vsel %vm1442_vm9, %v2725_v29, 128  ;;  %vm1447_vm10 = vcmp.le.f32.partialorder %v3081_v28, %v1426_v35  ;;  %v3180_v4 = vcvt.s32.f32 %v1526_v12 }
 0x3ff   : > { %v3183_v11 = vsel %vm1447_vm10, %v2725_v29, 128  ;;  %1571 = vmin.xlane.f32.xlu1 %v3174_v7  ;;  %v1540_v55 = vshra.s32 %v3177_v26, 16 }
 0x400   : > { %v1428_v45 = vpop.xlane.xlu1 %1427  ;;  %1529 = vmin.xlane.f32.xlu0 %v3180_v4  ;;  %v1610_v59 = vshra.s32 %v3183_v11, 16 }
 0x401   : > { %vm1448_vm11 = vcmp.le.f32.partialorder %v3089_v63, %v1428_v45  ;;  %v1422_v31 = vpop.xlane.xlu0 %1421  ;;  %v3190_v56 = vcvt.s32.f32 %v1540_v55 }
 0x402   : > { %v3193_v28 = vsel %vm1448_vm11, %v2725_v29, 128  ;;  %vm1445_vm12 = vcmp.le.f32.partialorder %v3094_v32, %v1422_v31  ;;  %v3196_v12 = vcvt.s32.f32 %v1610_v59 }
 0x403   : > { %v3199_v35 = vsel %vm1445_vm12, %v2725_v29, 128  ;;  %1543 = vmin.xlane.f32.xlu1 %v3190_v56  ;;  %v1624_v19 = vshra.s32 %v3193_v28, 16 }
 0x404   : > { %v1424_v53 = vpop.xlane.xlu1 %1423  ;;  %1613 = vmin.xlane.f32.xlu0 %v3196_v12  ;;  %v1582_v55 = vshra.s32 %v3199_v35, 16 }
 0x405   : > { %vm1446_vm13 = vcmp.le.f32.partialorder %v3100_v3, %v1424_v53  ;;  %v1430_v63 = vpop.xlane.xlu0 %1429  ;;  %v3206_v45 = vcvt.s32.f32 %v1624_v19 }
 0x406   : > { %v3209_v32 = vsel %vm1446_vm13, %v2725_v29, 128  ;;  %vm1449_vm14 = vcmp.le.f32.partialorder %v3105_v40, %v1430_v63  ;;  %v3212_v59 = vcvt.s32.f32 %v1582_v55 }
 0x407   : > { %v3215_v31 = vsel %vm1449_vm14, %v2725_v29, 128  ;;  %1627 = vmin.xlane.f32.xlu1 %v3206_v45  ;;  %v1596_v62 = vshra.s32 %v3209_v32, 16 }
 0x408   : > { %v1432_v51 = vpop.xlane.xlu1 %1431  ;;  %1585 = vmin.xlane.f32.xlu0 %v3212_v59  ;;  %v1638_v53 = vshra.s32 %v3215_v31, 16 }
 0x409   : > { %vm1450_vm15 = vcmp.le.f32.partialorder %v3110_v49, %v1432_v51  ;;  %v1434_v19 = vpop.xlane.xlu0 %1433  ;;  %v3222_v3 = vcvt.s32.f32 %v1596_v62 }
 0x40a   : > { %v3225_v40 = vsel %vm1450_vm15, %v2725_v29, 128  ;;  %vm1451_vm0 = vcmp.le.f32.partialorder %v3115_v1, %v1434_v19  ;;  %v3228_v55 = vcvt.s32.f32 %v1638_v53 }
 0x40b   : > { %v3231_v63 = vsel %vm1451_vm0, %v2725_v29, 128  ;;  %1599 = vmin.xlane.f32.xlu1 %v3222_v3  ;;  %v1652_v47 = vshra.s32 %v3225_v40, 16 }
 0x40c   : > { %v1436_v52 = vpop.xlane.xlu1 %1435  ;;  %1641 = vmin.xlane.f32.xlu0 %v3228_v55  ;;  %v1666_v51 = vshra.s32 %v3231_v63, 16 }
 0x40d   : > { %vm1452_vm1 = vcmp.le.f32.partialorder %v3120_v8, %v1436_v52  ;;  %v3238_v62 = vcvt.s32.f32 %v1652_v47  ;;  %v1497_v47 = vand.u32 65535, %v3125_v21  ;;  %v1511_v52 = vand.u32 65535, %v3133_v9 }
 0x40e   : > { %v3241_v49 = vsel %vm1452_vm1, %v2725_v29, 128  ;;  %v3243_v1 = vcvt.s32.f32 %v1666_v51 }
 0x40f   : > { %1655 = vmin.xlane.f32.xlu1 %v3238_v62  ;;  %v1680_v53 = vshra.s32 %v3241_v49, 16 }
 0x410   : > { %1669 = vmin.xlane.f32.xlu0 %v3243_v1 }
 0x411   : > { %v3248_v19 = vcvt.s32.f32 %v1680_v53 }
 0x413   : > { %1683 = vmin.xlane.f32.xlu1 %v3248_v19 }
 0x414   : > { %937 = vadd.xlane.f32.xlu0 %v2937_v6 }
 0x417   : > { %939 = vadd.xlane.f32.xlu1 %v2956_v34  ;;  %v1483_v34 = vand.u32 65535, %v3147_v18  ;;  %v1609_v18 = vand.u32 65535, %v3183_v11  ;;  %v1581_v11 = vand.u32 65535, %v3199_v35  ;;  %v1637_v35 = vand.u32 65535, %v3215_v31 }
 0x418   : > { %941 = vadd.xlane.f32.xlu0 %v2933_v10  ;;  %v1469_v10 = vand.u32 65535, %v3136_v27  ;;  %v1539_v27 = vand.u32 65535, %v3177_v26  ;;  %v1665_v31 = vand.u32 65535, %v3231_v63 }
 0x41a   : > { %v1541_v51 = vcvt.s32.f32 %v1539_v27  ;;  %v1667_v63 = vcvt.s32.f32 %v1665_v31 }
 0x41b   : > { %943 = vadd.xlane.f32.xlu1 %v2951_v24 }
 0x41c   : > { %945 = vadd.xlane.f32.xlu0 %v2989_v58  ;;  %v1513_v58 = vcvt.s32.f32 %v1511_v52 }
 0x41f   : > { %947 = vadd.xlane.f32.xlu1 %v2994_v60  ;;  %v1471_v60 = vcvt.s32.f32 %v1469_v10 }
 0x420   : > { %949 = vadd.xlane.f32.xlu0 %v2976_v25 }
 0x423   : > { %951 = vadd.xlane.f32.xlu1 %v2978_v17 }
 0x424   : > { %953 = vadd.xlane.f32.xlu0 %v3032_v33 }
 0x427   : > { %955 = vadd.xlane.f32.xlu1 %v3035_v14  ;;  %v1499_v14 = vcvt.s32.f32 %v1497_v47 }
 0x428   : > { %957 = vadd.xlane.f32.xlu0 %v3010_v22  ;;  %v1553_v22 = vand.u32 65535, %v3151_v57 }
 0x42a   : > { %v1555_v21 = vcvt.s32.f32 %v1553_v22 }
 0x42b   : > { %959 = vadd.xlane.f32.xlu1 %v3015_v44 }
 0x42c   : > { %961 = vadd.xlane.f32.xlu0 %v3050_v43  ;;  %v1567_v43 = vand.u32 65535, %v3161_v0 }
 0x42f   : > { %963 = vadd.xlane.f32.xlu1 %v3059_v61 }
 0x430   : > { %965 = vadd.xlane.f32.xlu0 %v3068_v2  ;;  %v1485_v2 = vcvt.s32.f32 %v1483_v34 }
 0x433   : > { %967 = vadd.xlane.f32.xlu1 %v3076_v54  ;;  %v1525_v54 = vand.u32 65535, %v3167_v13  ;;  %v1623_v13 = vand.u32 65535, %v3193_v28  ;;  %v1595_v28 = vand.u32 65535, %v3209_v32  ;;  %v1651_v32 = vand.u32 65535, %v3225_v40 }
 0x434   : > { %v1679_v40 = vand.u32 65535, %v3241_v49 }
 0x435   : > { %v1625_v10 = vcvt.s32.f32 %v1623_v13 }
 0x436   : > { %v1681_v49 = vcvt.s32.f32 %v1679_v40 }
 0x480   : > { %v3270_v6 = vpop.xlane.xlu0 %1501 }
 0x481   : > { %vm1503_vm2 = vcmp.eq.f32.partialorder %v3130_v38, %v3270_v6 }
 0x482   : > { %v1504_v24 = vsel %vm1503_vm2, %v1499_v14, inf }
 0x483   : > { %1505 = vmin.xlane.f32.xlu0 %v1504_v24 }
 0x484   : > { %v3275_v25 = vpop.xlane.xlu1 %1515  ;;  %v3277_v17 = vpop.xlane.xlu0 %1473 }
 0x485   : > { %vm1517_vm3 = vcmp.eq.f32.partialorder %v3142_v23, %v3275_v25  ;;  %vm1475_vm4 = vcmp.eq.f32.partialorder %v3144_v48, %v3277_v17  ;;  %v1569_v48 = vcvt.s32.f32 %v1567_v43 }
 0x486   : > { %v1518_v44 = vsel %vm1517_vm3, %v1513_v58, inf  ;;  %v1476_v33 = vsel %vm1475_vm4, %v1471_v60, inf  ;;  %v1597_v58 = vcvt.s32.f32 %v1595_v28 }
 0x487   : > { %1519 = vmin.xlane.f32.xlu1 %v1518_v44  ;;  %1477 = vmin.xlane.f32.xlu0 %v1476_v33  ;;  %v1653_v33 = vcvt.s32.f32 %v1651_v32 }
 0x488   : > { %v3285_v61 = vpop.xlane.xlu1 %1487 }
 0x489   : > { %v3288_v8 = vpop.xlane.xlu0 %1557  ;;  %vm1489_vm5 = vcmp.eq.f32.partialorder %v3158_v46, %v3285_v61  ;;  %v1527_v46 = vcvt.s32.f32 %v1525_v54 }
 0x48a   : > { %v1490_v38 = vsel %vm1489_vm5, %v1485_v2, inf  ;;  %vm1559_vm6 = vcmp.eq.f32.partialorder %v3164_v30, %v3288_v8 }
 0x48b   : > { %1491 = vmin.xlane.f32.xlu1 %v1490_v38  ;;  %v1560_v9 = vsel %vm1559_vm6, %v1555_v21, inf }
 0x48c   : > { %v3295_v23 = vpop.xlane.xlu1 %1571  ;;  %1561 = vmin.xlane.f32.xlu0 %v1560_v9 }
 0x48d   : > { %v3298_v57 = vpop.xlane.xlu0 %1529  ;;  %vm1573_vm7 = vcmp.eq.f32.partialorder %v3174_v7, %v3295_v23  ;;  %v1611_v7 = vcvt.s32.f32 %v1609_v18  ;;  %v1578_v32 = vcvt.f32.s32 %v3295_v23 }
 0x48e   : > { %v1574_v0 = vsel %vm1573_vm7, %v1569_v48, inf  ;;  %vm1531_vm8 = vcmp.eq.f32.partialorder %v3180_v4, %v3298_v57 }
 0x48f   : > { %1575 = vmin.xlane.f32.xlu1 %v1574_v0  ;;  %v1532_v30 = vsel %vm1531_vm8, %v1527_v46, inf  ;;  %v3366_v23 = vshll.u32 %v1578_v32, 16 }
 0x490   : > { %v3305_v26 = vpop.xlane.xlu1 %1543  ;;  %1533 = vmin.xlane.f32.xlu0 %v1532_v30 }
 0x491   : > { %v3308_v53 = vpop.xlane.xlu0 %1613  ;;  %vm1545_vm9 = vcmp.eq.f32.partialorder %v3190_v56, %v3305_v26  ;;  %v1583_v56 = vcvt.s32.f32 %v1581_v11  ;;  %v1508_v11 = vcvt.f32.s32 %v3270_v6 }
 0x492   : > { %v1546_v47 = vsel %vm1545_vm9, %v1541_v51, inf  ;;  %vm1615_vm10 = vcmp.eq.f32.partialorder %v3196_v12, %v3308_v53 }
 0x493   : > { %1547 = vmin.xlane.f32.xlu1 %v1546_v47  ;;  %v1616_v4 = vsel %vm1615_vm10, %v1611_v7, inf  ;;  %v1522_v7 = vcvt.f32.s32 %v3275_v25  ;;  %v1509_v6 = vshll.u32 %v1508_v11, 16 }
 0x494   : > { %v3315_v52 = vpop.xlane.xlu1 %1627  ;;  %1617 = vmin.xlane.f32.xlu0 %v1616_v4  ;;  %v1480_v4 = vcvt.f32.s32 %v3277_v17  ;;  %v1550_v17 = vcvt.f32.s32 %v3305_v26 }
 0x495   : > { %v3318_v14 = vpop.xlane.xlu0 %1585  ;;  %vm1629_vm11 = vcmp.eq.f32.partialorder %v3206_v45, %v3315_v52  ;;  %v1639_v45 = vcvt.s32.f32 %v1637_v35 }
 0x496   : > { %v1630_v24 = vsel %vm1629_vm11, %v1625_v10, inf  ;;  %vm1587_vm12 = vcmp.eq.f32.partialorder %v3212_v59, %v3318_v14  ;;  %v1481_v31 = vshll.u32 %v1480_v4, 16 }
 0x497   : > { %1631 = vmin.xlane.f32.xlu1 %v1630_v24  ;;  %v1588_v12 = vsel %vm1587_vm12, %v1583_v56, inf  ;;  %v1494_v24 = vcvt.f32.s32 %v3285_v61 }
 0x498   : > { %v3325_v34 = vpop.xlane.xlu1 %1599  ;;  %1589 = vmin.xlane.f32.xlu0 %v1588_v12  ;;  %v1564_v12 = vcvt.f32.s32 %v3288_v8 }
 0x499   : > { %v3328_v60 = vpop.xlane.xlu0 %1641  ;;  %vm1601_vm13 = vcmp.eq.f32.partialorder %v3222_v3, %v3325_v34  ;;  %v1495_v8 = vshll.u32 %v1494_v24, 16 }
 0x49a   : > { %v1602_v22 = vsel %vm1601_vm13, %v1597_v58, inf  ;;  %vm1643_vm14 = vcmp.eq.f32.partialorder %v3228_v55, %v3328_v60  ;;  %v1523_v58 = vshll.u32 %v1522_v7, 16 }
 0x49b   : > { %1603 = vmin.xlane.f32.xlu1 %v1602_v22  ;;  %v1644_v59 = vsel %vm1643_vm14, %v1639_v45, inf  ;;  %v1536_v45 = vcvt.f32.s32 %v3298_v57  ;;  %v1634_v57 = vcvt.f32.s32 %v3315_v52 }
 0x49c   : > { %v3335_v44 = vpop.xlane.xlu1 %1655  ;;  %1645 = vmin.xlane.f32.xlu0 %v1644_v59 }
 0x49d   : > { %v3337_v43 = vpop.xlane.xlu0 %1669  ;;  %vm1657_vm15 = vcmp.eq.f32.partialorder %v3238_v62, %v3335_v44 }
 0x49e   : > { %v1658_v3 = vsel %vm1657_vm15, %v1653_v33, inf  ;;  %vm1671_vm0 = vcmp.eq.f32.partialorder %v3243_v1, %v3337_v43 }
 0x49f   : > { %1659 = vmin.xlane.f32.xlu1 %v1658_v3  ;;  %v1672_v55 = vsel %vm1671_vm0, %v1667_v63, inf  ;;  %v1565_v63 = vshll.u32 %v1564_v12, 16 }
 0x4a0   : > { %v3343_v2 = vpop.xlane.xlu1 %1683  ;;  %1673 = vmin.xlane.f32.xlu0 %v1672_v55 }
 0x4a1   : > { %vm1685_vm1 = vcmp.eq.f32.partialorder %v3248_v19, %v3343_v2  ;;  %v938_v21 = vpop.xlane.xlu0 %937 }
 0x4a2   : > { %v1686_v54 = vsel %vm1685_vm1, %v1681_v49, inf  ;;  %v1620_v49 = vcvt.f32.s32 %v3308_v53 }
 0x4a3   : > { %1687 = vmin.xlane.f32.xlu1 %v1686_v54  ;;  %v3370_v54 = vshll.u32 %v1536_v45, 16 }
 0x4a4   : > { %v940_v38 = vpop.xlane.xlu1 %939 }
 0x4a5   : > { %v942_v9 = vpop.xlane.xlu0 %941 }
 0x4a6   : > { %2439 = vlog2.f32 %v942_v9  ;;  %v1592_v9 = vcvt.f32.s32 %v3318_v14 }
 0x4a7   : > { %2441 = vlog2.f32 %v938_v21  ;;  %v3372_v21 = vshll.u32 %v1550_v17, 16 }
 0x4a8   : > { %v944_v62 = vpop.xlane.xlu1 %943  ;;  %v3392_v4 = vshll.u32 %v1592_v9, 16 }
 0x4a9   : > { %v946_v27 = vpop.xlane.xlu0 %945  ;;  %2443 = vlog2.f32 %v944_v62 }
 0x4aa   : > { %2445 = vlog2.f32 %v940_v38 }
 0x4ac   : > { %v948_v48 = vpop.xlane.xlu1 %947 }
 0x4ad   : > { %v950_v18 = vpop.xlane.xlu0 %949 }
 0x4ae   : > { %2447 = vlog2.f32 %v950_v18 }
 0x4af   : > { %2449 = vlog2.f32 %v946_v27 }
 0x4b0   : > { %v952_v46 = vpop.xlane.xlu1 %951  ;;  %v2440_v51 = vpop.eup %2439 }
 0x4b1   : > { %v954_v1 = vpop.xlane.xlu0 %953  ;;  %2451 = vlog2.f32 %v952_v46  ;;  %v2442_v28 = vpop.eup %2441  ;;  %v974_v10 = vmul.f32 0.6931472, %v2440_v51  ;;  %v3384_v51 = vshll.u32 %v1634_v57, 16 }
 0x4b2   : > { %2453 = vlog2.f32 %v948_v48  ;;  %v970_v22 = vmul.f32 0.6931472, %v2442_v28 }
 0x4b3   : > { %v2444_v56 = vpop.eup %2443  ;;  %v1003_v61 = vadd.f32 %v974_v10, %v2885_v20 }
 0x4b4   : > { %v3347_v0 = vpop.xlane.xlu1 %955  ;;  %v2446_v25 = vpop.eup %2445  ;;  %v976_v59 = vmul.f32 0.6931472, %v2444_v56  ;;  %v1001_v52 = vadd.f32 %v970_v22, %v2889_v16 }
 0x4b5   : > { %v958_v30 = vpop.xlane.xlu0 %957  ;;  %v972_v26 = vmul.f32 0.6931472, %v2446_v25  ;;  %v1711_v48 = vsub.f32 %v2733_v36, %v1003_v61  ;;  %v3755_v61 = vld [vmem:[#allocation19_spill] sm:$0xff] }
 0x4b6   : > { %2455 = vlog2.f32 %v958_v30  ;;  %v1004_v53 = vadd.f32 %v976_v59, %v2897_v50 }
 0x4b7   : > { %2457 = vlog2.f32 %v954_v1  ;;  %v1002_v11 = vadd.f32 %v972_v26, %v2901_v15  ;;  %v1709_v15 = vsub.f32 %v2737_v39, %v1001_v52 }
 0x4b8   : > { %v960_v13 = vpop.xlane.xlu1 %959  ;;  %v2448_v55 = vpop.eup %2447  ;;  %v1712_v56 = vsub.f32 %v2743_v41, %v1004_v53 }
 0x4b9   : > { %v3349_v19 = vpop.xlane.xlu0 %961  ;;  %2459 = vlog2.f32 %v960_v13  ;;  %v2450_v20 = vpop.eup %2449  ;;  %v982_v46 = vmul.f32 0.6931472, %v2448_v55  ;;  %v3382_v13 = vshll.u32 %v1620_v49, 16 }
 0x4ba   : > { %v978_v7 = vmul.f32 0.6931472, %v2450_v20  ;;  %2461 = vlog2.f32 %v3347_v0 }
 0x4bb   : > { %v2452_v18 = vpop.eup %2451  ;;  %2463 = vlog2.f32 %v3349_v19  ;;  %v1007_v0 = vadd.f32 %v982_v46, %v2911_v37  ;;  %v1710_v19 = vsub.f32 %v2747_v42, %v1002_v11  ;;  %v3760_v11 = vld [vmem:[#allocation21_spill] sm:$0xff] }
 0x4bc   : > { %v3353_v47 = vpop.xlane.xlu1 %963  ;;  %v984_v28 = vmul.f32 0.6931472, %v2452_v18  ;;  %v2454_v24 = vpop.eup %2453  ;;  %v1005_v17 = vadd.f32 %v978_v7, %v2927_v5  ;;  %v1606_v5 = vcvt.f32.s32 %v3325_v34  ;;  %v3757_v34 = vld [vmem:[#allocation8_spill] sm:$0xff] }
 0x4bd   : > { %v3356_v35 = vpop.xlane.xlu0 %965  ;;  %2465 = vlog2.f32 %v3353_v47  ;;  %v980_v59 = vmul.f32 0.6931472, %v2454_v24  ;;  %v3758_v18 = vld [vmem:[#allocation20_spill] sm:$0xff] }
 0x4be   : > { %2467 = vlog2.f32 %v3356_v35  ;;  %v1607_v24 = vshll.u32 %v1606_v5, 16 }
 0x4bf   : > { %v1006_v46 = vadd.f32 %v980_v59, %v3758_v18  ;;  %v3767_v18 = vld [vmem:[#allocation24_spill] sm:$0xff] }
 0x4c0   : > { %v3363_v40 = vpop.xlane.xlu1 %967 }
 0x4c1   : > { %2469 = vlog2.f32 %v3363_v40  ;;  %v3759_v40 = vld [vmem:[#allocation9_spill] sm:$0xff] }
 0x510   : > { %v1506_v33 = vpop.xlane.xlu0 %1505 }
 0x511   : > { %v1507_v3 = vcvt.f32.s32 %v1506_v33 }
 0x513   : > { %v3374_v38 = vadd.s32 %v1509_v6, %v1507_v3  ;;  %v2456_v6 = vpop.eup %2455  ;;  %v1008_v3 = vadd.f32 %v984_v28, %v3755_v61 }
 0x514   : > { %v1520_v62 = vpop.xlane.xlu1 %1519  ;;  %v1478_v27 = vpop.xlane.xlu0 %1477  ;;  %v990_v49 = vmul.f32 0.6931472, %v2456_v6 }
 0x515   : > { %v1521_v1 = vcvt.f32.s32 %v1520_v62  ;;  %v1479_v30 = vcvt.f32.s32 %v1478_v27  ;;  %vm1695_vm2 = vcmp.eq.s32.totalorder %v2725_v29, %v3374_v38  ;;  %v2458_v22 = vpop.eup %2457  ;;  %v1716_v52 = vsub.f32 %v3757_v34, %v1008_v3 }
 0x516   : > { %v1727_v14 = vsel %vm1695_vm2, %v1711_v48, 0.0  ;;  %v2460_v55 = vpop.eup %2459  ;;  %v986_v35 = vmul.f32 0.6931472, %v2458_v22  ;;  %v1011_v7 = vadd.f32 %v990_v49, %v3760_v11  ;;  %v1676_v11 = vcvt.f32.s32 %v3337_v43  ;;  %v3770_v43 = vld [vmem:[#allocation26_spill] sm:$0xff] }
 0x517   : > { %v3388_v50 = vadd.s32 %v1523_v58, %v1521_v1  ;;  %v3390_v16 = vadd.s32 %v1481_v31, %v1479_v30  ;;  %1745 = vadd.xlane.f32.xlu0 %v1727_v14  ;;  %v992_v27 = vmul.f32 0.6931472, %v2460_v55  ;;  %v2462_v1 = vpop.eup %2461  ;;  %vm1813_vm2 = vcmp.eq.s32.totalorder %v2725_v29, 125 }
 0x518   : > { %v1492_v10 = vpop.xlane.xlu1 %1491  ;;  %v2464_v28 = vpop.eup %2463  ;;  %v988_v6 = vmul.f32 0.6931472, %v2462_v1 }
 0x519   : > { %v1493_v12 = vcvt.f32.s32 %v1492_v10  ;;  %v1562_v32 = vpop.xlane.xlu0 %1561  ;;  %vm1696_vm3 = vcmp.eq.s32.totalorder %v2725_v29, %v3388_v50  ;;  %vm1693_vm4 = vcmp.eq.s32.totalorder %v2725_v29, %v3390_v16  ;;  %v2466_v22 = vpop.eup %2465  ;;  %v994_v59 = vmul.f32 0.6931472, %v2464_v28 }
 0x51a   : > { %v1563_v58 = vcvt.f32.s32 %v1562_v32  ;;  %v1728_v25 = vsel %vm1696_vm3, %v1712_v56, 0.0  ;;  %v1725_v45 = vsel %vm1693_vm4, %v1709_v15, 0.0  ;;  %v3761_v15 = vld [vmem:[#allocation23_spill] sm:$0xff]  ;;  %v2468_v55 = vpop.eup %2467  ;;  %vm1830_vm3 = vcmp.eq.s32.totalorder %v2725_v29, 126 }
 0x51b   : > { %v3404_v31 = vadd.s32 %v1495_v8, %v1493_v12  ;;  %1747 = vadd.xlane.f32.xlu1 %v1728_v25  ;;  %1741 = vadd.xlane.f32.xlu0 %v1725_v45  ;;  %v3756_v8 = vld [vmem:[#allocation7_spill] sm:$0xff]  ;;  %v3763_v45 = vld [vmem:[#allocation22_spill] sm:$0xff]  ;;  %v2470_v1 = vpop.eup %2469  ;;  %vm1847_vm4 = vcmp.eq.s32.totalorder %v2725_v29, 127 }
 0x51c   : > { %v3408_v37 = vadd.s32 %v1565_v63, %v1563_v58  ;;  %v1576_v33 = vpop.xlane.xlu1 %1575  ;;  %v1715_v26 = vsub.f32 %v3756_v8, %v1007_v0  ;;  %v1009_v0 = vadd.f32 %v986_v35, %v3761_v15  ;;  %v996_v35 = vmul.f32 0.6931472, %v2466_v22  ;;  %v3771_v22 = vld [vmem:[#allocation15_spill] sm:$0xff] }
 0x51d   : > { %v1577_v57 = vcvt.f32.s32 %v1576_v33  ;;  %v1534_v47 = vpop.xlane.xlu0 %1533  ;;  %vm1694_vm5 = vcmp.eq.s32.totalorder %v2725_v29, %v3404_v31 }
 0x51e   : > { %v1535_v20 = vcvt.f32.s32 %v1534_v47  ;;  %v1726_v9 = vsel %vm1694_vm5, %v1710_v19, 0.0  ;;  %vm1699_vm6 = vcmp.eq.s32.totalorder %v2725_v29, %v3408_v37  ;;  %v1662_v47 = vcvt.f32.s32 %v3335_v44 }
 0x51f   : > { %v3419_v63 = vadd.s32 %v3366_v23, %v1577_v57  ;;  %1743 = vadd.xlane.f32.xlu1 %v1726_v9  ;;  %v1731_v62 = vsel %vm1699_vm6, %v1715_v26, 0.0  ;;  %v1713_v23 = vsub.f32 %v3759_v40, %v1005_v17  ;;  %v1012_v17 = vadd.f32 %v992_v27, %v3763_v45 }
 0x520   : > { %v3422_v48 = vadd.s32 %v3370_v54, %v1535_v20  ;;  %v1548_v53 = vpop.xlane.xlu1 %1547  ;;  %1753 = vadd.xlane.f32.xlu0 %v1731_v62  ;;  %v1648_v54 = vcvt.f32.s32 %v3328_v60  ;;  %v3762_v60 = vld [vmem:[#allocation10_spill] sm:$0xff]  ;;  %v3765_v20 = vld [vmem:[#allocation13_spill] sm:$0xff]  ;;  %v1663_v28 = vshll.u32 %v1662_v47, 16  ;;  %v3773_v47 = vld [vmem:[#allocation16_spill] sm:$0xff] }
 0x521   : > { %v1549_v30 = vcvt.f32.s32 %v1548_v53  ;;  %v1618_v14 = vpop.xlane.xlu0 %1617  ;;  %vm1700_vm7 = vcmp.eq.s32.totalorder %v2725_v29, %v3419_v63  ;;  %v1714_v19 = vsub.f32 %v3762_v60, %v1006_v46  ;;  %v1717_v9 = vsub.f32 %v3765_v20, %v1009_v0  ;;  %v3766_v53 = vld [vmem:[#allocation12_spill] sm:$0xff] }
 0x522   : > { %v1619_v10 = vcvt.f32.s32 %v1618_v14  ;;  %v1732_v56 = vsel %vm1700_vm7, %v1716_v52, 0.0  ;;  %vm1697_vm8 = vcmp.eq.s32.totalorder %v2725_v29, %v3422_v48  ;;  %v1649_v49 = vshll.u32 %v1648_v54, 16 }
 0x523   : > { %v3434_v12 = vadd.s32 %v3372_v21, %v1549_v30  ;;  %1755 = vadd.xlane.f32.xlu1 %v1732_v56  ;;  %v1729_v32 = vsel %vm1697_vm8, %v1713_v23, 0.0  ;;  %v3764_v21 = vld [vmem:[#allocation11_spill] sm:$0xff]  ;;  %v1720_v52 = vsub.f32 %v3766_v53, %v1012_v17  ;;  %v1010_v46 = vadd.f32 %v988_v6, %v3767_v18  ;;  %v3769_v6 = vld [vmem:[#allocation14_spill] sm:$0xff]  ;;  %v3775_v18 = vld [vmem:[#allocation17_spill] sm:$0xff] }
 0x524   : > { %v3438_v58 = vadd.s32 %v3382_v13, %v1619_v10  ;;  %v1632_v25 = vpop.xlane.xlu1 %1631  ;;  %1749 = vadd.xlane.f32.xlu0 %v1729_v32  ;;  %v1719_v3 = vsub.f32 %v3764_v21, %v1011_v7  ;;  %v998_v30 = vmul.f32 0.6931472, %v2468_v55  ;;  %v1690_v54 = vcvt.f32.s32 %v3343_v2 }
 0x525   : > { %v1633_v33 = vcvt.f32.s32 %v1632_v25  ;;  %v1590_v61 = vpop.xlane.xlu0 %1589  ;;  %vm1698_vm9 = vcmp.eq.s32.totalorder %v2725_v29, %v3434_v12  ;;  %v1000_v32 = vmul.f32 0.6931472, %v2470_v1  ;;  %v1718_v25 = vsub.f32 %v3769_v6, %v1010_v46 }
 0x526   : > { %v1591_v57 = vcvt.f32.s32 %v1590_v61  ;;  %v1730_v13 = vsel %vm1698_vm9, %v1714_v19, 0.0  ;;  %vm1703_vm10 = vcmp.eq.s32.totalorder %v2725_v29, %v3438_v58  ;;  %v1014_v19 = vadd.f32 %v996_v35, %v3770_v43 }
 0x527   : > { %v3449_v26 = vadd.s32 %v3384_v51, %v1633_v33  ;;  %1751 = vadd.xlane.f32.xlu1 %v1730_v13  ;;  %v1735_v5 = vsel %vm1703_vm10, %v1719_v3, 0.0  ;;  %v3768_v51 = vld [vmem:[#allocation25_spill] sm:$0xff]  ;;  %v1677_v33 = vshll.u32 %v1676_v11, 16 }
 0x528   : > { %v3453_v62 = vadd.s32 %v3392_v4, %v1591_v57  ;;  %v1604_v27 = vpop.xlane.xlu1 %1603  ;;  %1761 = vadd.xlane.f32.xlu0 %v1735_v5  ;;  %v1013_v23 = vadd.f32 %v994_v59, %v3768_v51  ;;  %v1722_v5 = vsub.f32 %v3773_v47, %v1014_v19 }
 0x529   : > { %v1605_v44 = vcvt.f32.s32 %v1604_v27  ;;  %v1646_v14 = vpop.xlane.xlu0 %1645  ;;  %vm1704_vm11 = vcmp.eq.s32.totalorder %v2725_v29, %v3449_v26  ;;  %v1691_v27 = vshll.u32 %v1690_v54, 16 }
 0x52a   : > { %v1647_v7 = vcvt.f32.s32 %v1646_v14  ;;  %v1736_v4 = vsel %vm1704_vm11, %v1720_v52, 0.0  ;;  %vm1701_vm12 = vcmp.eq.s32.totalorder %v2725_v29, %v3453_v62  ;;  %v1721_v2 = vsub.f32 %v3771_v22, %v1013_v23  ;;  %v3776_v14 = vld [vmem:[#allocation18_spill] sm:$0xff] }
 0x52b   : > { %v3464_v10 = vadd.s32 %v1607_v24, %v1605_v44  ;;  %1763 = vadd.xlane.f32.xlu1 %v1736_v4  ;;  %v1733_v56 = vsel %vm1701_vm12, %v1717_v9, 0.0  ;;  %v3772_v24 = vld [vmem:[#allocation27_spill] sm:$0xff]  ;;  %v3774_v9 = vld [vmem:[#allocation28_spill] sm:$0xff] }
 0x52c   : > { %v3466_v15 = vadd.s32 %v1649_v49, %v1647_v7  ;;  %v1660_v0 = vpop.xlane.xlu1 %1659  ;;  %1757 = vadd.xlane.f32.xlu0 %v1733_v56  ;;  %v1015_v59 = vadd.f32 %v998_v30, %v3772_v24  ;;  %v1016_v35 = vadd.f32 %v1000_v32, %v3774_v9 }
 0x52d   : > { %v1661_v45 = vcvt.f32.s32 %v1660_v0  ;;  %v1674_v17 = vpop.xlane.xlu0 %1673  ;;  %vm1702_vm13 = vcmp.eq.s32.totalorder %v2725_v29, %v3464_v10 }
 0x52e   : > { %v1675_v61 = vcvt.f32.s32 %v1674_v17  ;;  %v1734_v3 = vsel %vm1702_vm13, %v1718_v25, 0.0  ;;  %vm1705_vm14 = vcmp.eq.s32.totalorder %v2725_v29, %v3466_v15  ;;  %v1723_v46 = vsub.f32 %v3775_v18, %v1015_v59 }
 0x52f   : > { %v3476_v55 = vadd.s32 %v1663_v28, %v1661_v45  ;;  %1759 = vadd.xlane.f32.xlu1 %v1734_v3  ;;  %v1737_v49 = vsel %vm1705_vm14, %v1721_v2, 0.0  ;;  %v1724_v51 = vsub.f32 %v3776_v14, %v1016_v35  ;;  %v1850_v17 = vcvt.s32.f32 %v3374_v38 }
 0x530   : > { %v3478_v57 = vadd.s32 %v1677_v33, %v1675_v61  ;;  %v1688_v13 = vpop.xlane.xlu1 %1687  ;;  %1765 = vadd.xlane.f32.xlu0 %v1737_v49  ;;  %v1851_v2 = vcvt.s32.f32 %v3388_v50 }
 0x531   : > { %v1689_v52 = vcvt.f32.s32 %v1688_v13  ;;  %vm1706_vm15 = vcmp.eq.s32.totalorder %v2725_v29, %v3476_v55 }
 0x532   : > { %v1738_v1 = vsel %vm1706_vm15, %v1722_v5, 0.0  ;;  %vm1707_vm0 = vcmp.eq.s32.totalorder %v2725_v29, %v3478_v57 }
 0x533   : > { %v3487_v30 = vadd.s32 %v1691_v27, %v1689_v52  ;;  %1767 = vadd.xlane.f32.xlu1 %v1738_v1  ;;  %v1739_v44 = vsel %vm1707_vm0, %v1723_v46, 0.0  ;;  %v1848_v52 = vcvt.s32.f32 %v3390_v16  ;;  %v1849_v46 = vcvt.s32.f32 %v3404_v31 }
 0x534   : > { %1769 = vadd.xlane.f32.xlu0 %v1739_v44 }
 0x535   : > { %vm1708_vm1 = vcmp.eq.s32.totalorder %v2725_v29, %v3487_v30 }
 0x536   : > { %v1740_v23 = vsel %vm1708_vm1, %v1724_v51, 0.0  ;;  %v1854_v51 = vcvt.s32.f32 %v3408_v37 }
 0x537   : > { %1771 = vadd.xlane.f32.xlu1 %v1740_v23  ;;  %v1855_v23 = vcvt.s32.f32 %v3419_v63 }
 0x5a4   : > { %v1746_v11 = vpop.xlane.xlu0 %1745 }
 0x5a8   : > { %v1748_v7 = vpop.xlane.xlu1 %1747  ;;  %v1742_v28 = vpop.xlane.xlu0 %1741 }
 0x5a9   : > { %v1774_v4 = vpack.c.bf16 %v1748_v7, %v1746_v11 }
 0x5ab   : > { %v1783_v54 = vunpack.c.l.bf16 %v1774_v4  ;;  %v1784_v56 = vunpack.c.h.bf16 %v1774_v4 }
 0x5ac   : > { %v1744_v32 = vpop.xlane.xlu1 %1743 }
 0x5ad   : > { %v1799_v0 = vsub.f32 %v1746_v11, %v1783_v54  ;;  %v1800_v25 = vsub.f32 %v1748_v7, %v1784_v56  ;;  %v1816_v43 = vsel %vm1813_vm2, %v1783_v54, %v2733_v36  ;;  %v1817_v19 = vsel %vm1813_vm2, %v1784_v56, %v2743_v41  ;;  %v1754_v45 = vpop.xlane.xlu0 %1753 }
 0x5ae   : > { %v1773_v24 = vpack.c.bf16 %v1744_v32, %v1742_v28 }
 0x5af   : > { %v1833_v59 = vsel %vm1830_vm3, %v1799_v0, %v1816_v43  ;;  %v1834_v33 = vsel %vm1830_vm3, %v1800_v25, %v1817_v19 }
 0x5b0   : > { %v1866_v61 = vsel %vm1847_vm4, %v1850_v17, %v1833_v59  ;;  %v1867_v36 = vsel %vm1847_vm4, %v1851_v2, %v1834_v33  ;;  %v1781_v3 = vunpack.c.l.bf16 %v1773_v24  ;;  %v1782_v41 = vunpack.c.h.bf16 %v1773_v24  ;;  %v1756_v49 = vpop.xlane.xlu1 %1755 }
 0x5b1   : > { %v2119_v13 = vpack.c.bf16 %v1867_v36, %v1866_v61  ;;  %v1776_v38 = vpack.c.bf16 %v1756_v49, %v1754_v45  ;;  %v1750_v5 = vpop.xlane.xlu0 %1749  ;;  %v1852_v36 = vcvt.s32.f32 %v3422_v48 }
 0x5b2   : > { %v1797_v50 = vsub.f32 %v1742_v28, %v1781_v3  ;;  %v1798_v9 = vsub.f32 %v1744_v32, %v1782_v41  ;;  %v1814_v35 = vsel %vm1813_vm2, %v1781_v3, %v2737_v39  ;;  %v1815_v27 = vsel %vm1813_vm2, %v1782_v41, %v2747_v42 }
 0x5b3   : > { %2151 = vst [vmem:[%s3522_s28 + $0x8] sm:$0xff] %v2119_v13   ;;  %v1787_v1 = vunpack.c.l.bf16 %v1776_v38  ;;  %v1788_v44 = vunpack.c.h.bf16 %v1776_v38  ;;  %v1853_v3 = vcvt.s32.f32 %v3434_v12  ;;  %v1858_v13 = vcvt.s32.f32 %v3438_v58 }
 0x5b4   : > { %v1831_v39 = vsel %vm1830_vm3, %v1797_v50, %v1814_v35  ;;  %v1832_v42 = vsel %vm1830_vm3, %v1798_v9, %v1815_v27  ;;  %v1752_v16 = vpop.xlane.xlu1 %1751  ;;  %v1859_v38 = vcvt.s32.f32 %v3449_v26 }
 0x5b5   : > { %v1864_v31 = vsel %vm1847_vm4, %v1848_v52, %v1831_v39  ;;  %v1865_v11 = vsel %vm1847_vm4, %v1849_v46, %v1832_v42  ;;  %v1803_v7 = vsub.f32 %v1754_v45, %v1787_v1  ;;  %v1804_v4 = vsub.f32 %v1756_v49, %v1788_v44  ;;  %v1762_v28 = vpop.xlane.xlu0 %1761 }
 0x5b6   : > { %v2114_v37 = vpack.c.bf16 %v1865_v11, %v1864_v31  ;;  %v1820_v63 = vsel %vm1813_vm2, %v1787_v1, %v3756_v8  ;;  %v1821_v54 = vsel %vm1813_vm2, %v1788_v44, %v3757_v34  ;;  %v1775_v56 = vpack.c.bf16 %v1752_v16, %v1750_v5 }
 0x5b7   : > { %v1837_v32 = vsel %vm1830_vm3, %v1803_v7, %v1820_v63  ;;  %v1838_v0 = vsel %vm1830_vm3, %v1804_v4, %v1821_v54  ;;  %v1856_v4 = vcvt.s32.f32 %v3453_v62  ;;  %v1860_v54 = vcvt.s32.f32 %v3466_v15 }
 0x5b8   : > { %2115 = vst [vmem:[%s3522_s28] sm:$0xff] %v2114_v37   ;;  %v1870_v25 = vsel %vm1847_vm4, %v1854_v51, %v1837_v32  ;;  %v1871_v43 = vsel %vm1847_vm4, %v1855_v23, %v1838_v0  ;;  %v1785_v8 = vunpack.c.l.bf16 %v1775_v56  ;;  %v1786_v19 = vunpack.c.h.bf16 %v1775_v56  ;;  %v1764_v45 = vpop.xlane.xlu1 %1763 }
 0x5b9   : > { %v2129_v17 = vpack.c.bf16 %v1871_v43, %v1870_v25  ;;  %v1778_v34 = vpack.c.bf16 %v1764_v45, %v1762_v28  ;;  %v1758_v2 = vpop.xlane.xlu0 %1757  ;;  %v1861_v56 = vcvt.s32.f32 %v3476_v55 }
 0x5ba   : > { %v1801_v24 = vsub.f32 %v1750_v5, %v1785_v8  ;;  %v1802_v59 = vsub.f32 %v1752_v16, %v1786_v19  ;;  %v1818_v33 = vsel %vm1813_vm2, %v1785_v8, %v3759_v40  ;;  %v1819_v61 = vsel %vm1813_vm2, %v1786_v19, %v3762_v60 }
 0x5bb   : > { %2153 = vst [vmem:[%s3522_s28 + $0x18] sm:$0xff] %v2129_v17   ;;  %v1791_v41 = vunpack.c.l.bf16 %v1778_v34  ;;  %v1792_v49 = vunpack.c.h.bf16 %v1778_v34 }
 0x5bc   : > { %v1835_v5 = vsel %vm1830_vm3, %v1801_v24, %v1818_v33  ;;  %v1836_v40 = vsel %vm1830_vm3, %v1802_v59, %v1819_v61  ;;  %v1760_v50 = vpop.xlane.xlu1 %1759 }
 0x5bd   : > { %v1868_v48 = vsel %vm1847_vm4, %v1852_v36, %v1835_v5  ;;  %v1869_v12 = vsel %vm1847_vm4, %v1853_v3, %v1836_v40  ;;  %v1807_v60 = vsub.f32 %v1762_v28, %v1791_v41  ;;  %v1808_v9 = vsub.f32 %v1764_v45, %v1792_v49  ;;  %v1766_v1 = vpop.xlane.xlu0 %1765 }
 0x5be   : > { %v2124_v35 = vpack.c.bf16 %v1869_v12, %v1868_v48  ;;  %v1824_v58 = vsel %vm1813_vm2, %v1791_v41, %v3764_v21  ;;  %v1825_v26 = vsel %vm1813_vm2, %v1792_v49, %v3766_v53  ;;  %v1777_v27 = vpack.c.bf16 %v1760_v50, %v1758_v2 }
 0x5bf   : > { %v1841_v52 = vsel %vm1830_vm3, %v1807_v60, %v1824_v58  ;;  %v1842_v46 = vsel %vm1830_vm3, %v1808_v9, %v1825_v26  ;;  %v1857_v28 = vcvt.s32.f32 %v3464_v10  ;;  %v1862_v3 = vcvt.s32.f32 %v3478_v57 }
 0x5c0   : > { %2152 = vst [vmem:[%s3522_s28 + $0x10] sm:$0xff] %v2124_v35   ;;  %v1874_v44 = vsel %vm1847_vm4, %v1858_v13, %v1841_v52  ;;  %v1875_v21 = vsel %vm1847_vm4, %v1859_v38, %v1842_v46  ;;  %v1789_v51 = vunpack.c.l.bf16 %v1777_v27  ;;  %v1790_v23 = vunpack.c.h.bf16 %v1777_v27  ;;  %v1768_v39 = vpop.xlane.xlu1 %1767 }
 0x5c1   : > { %v2139_v53 = vpack.c.bf16 %v1875_v21, %v1874_v44  ;;  %v1779_v42 = vpack.c.bf16 %v1768_v39, %v1766_v1  ;;  %v1770_v43 = vpop.xlane.xlu0 %1769  ;;  %v1863_v41 = vcvt.s32.f32 %v3487_v30 }
 0x5c2   : > { %v1805_v16 = vsub.f32 %v1758_v2, %v1789_v51  ;;  %v1806_v31 = vsub.f32 %v1760_v50, %v1790_v23  ;;  %v1822_v11 = vsel %vm1813_vm2, %v1789_v51, %v3765_v20  ;;  %v1823_v7 = vsel %vm1813_vm2, %v1790_v23, %v3769_v6 }
 0x5c3   : > { %2155 = vst [vmem:[%s3522_s28 + $0x28] sm:$0xff] %v2139_v53   ;;  %v1793_v37 = vunpack.c.l.bf16 %v1779_v42  ;;  %v1794_v63 = vunpack.c.h.bf16 %v1779_v42 }
 0x5c4   : > { %v1839_v32 = vsel %vm1830_vm3, %v1805_v16, %v1822_v11  ;;  %v1840_v20 = vsel %vm1830_vm3, %v1806_v31, %v1823_v7  ;;  %v1772_v0 = vpop.xlane.xlu1 %1771 }
 0x5c5   : > { %v1872_v62 = vsel %vm1847_vm4, %v1856_v4, %v1839_v32  ;;  %v1873_v10 = vsel %vm1847_vm4, %v1857_v28, %v1840_v20  ;;  %v1809_v6 = vsub.f32 %v1766_v1, %v1793_v37  ;;  %v1810_v25 = vsub.f32 %v1768_v39, %v1794_v63 }
 0x5c6   : > { %v2134_v15 = vpack.c.bf16 %v1873_v10, %v1872_v62  ;;  %v1826_v55 = vsel %vm1813_vm2, %v1793_v37, %v3771_v22  ;;  %v1827_v8 = vsel %vm1813_vm2, %v1794_v63, %v3773_v47  ;;  %v1780_v19 = vpack.c.bf16 %v1772_v0, %v1770_v43 }
 0x5c7   : > { %v1843_v45 = vsel %vm1830_vm3, %v1809_v6, %v1826_v55  ;;  %v1844_v17 = vsel %vm1830_vm3, %v1810_v25, %v1827_v8 }
 0x5c8   : > { %2154 = vst [vmem:[%s3522_s28 + $0x20] sm:$0xff] %v2134_v15   ;;  %v1876_v34 = vsel %vm1847_vm4, %v1860_v54, %v1843_v45  ;;  %v1877_v22 = vsel %vm1847_vm4, %v1861_v56, %v1844_v17  ;;  %v1795_v2 = vunpack.c.l.bf16 %v1780_v19  ;;  %v1796_v24 = vunpack.c.h.bf16 %v1780_v19 }
 0x5c9   : > { %v2144_v59 = vpack.c.bf16 %v1877_v22, %v1876_v34 }
 0x5ca   : > { %v1811_v33 = vsub.f32 %v1770_v43, %v1795_v2  ;;  %v1812_v47 = vsub.f32 %v1772_v0, %v1796_v24  ;;  %v1828_v61 = vsel %vm1813_vm2, %v1795_v2, %v3775_v18  ;;  %v1829_v36 = vsel %vm1813_vm2, %v1796_v24, %v3776_v14 }
 0x5cb   : > { %2156 = vst [vmem:[%s3522_s28 + $0x30] sm:$0xff] %v2144_v59  }
 0x5cc   : > { %v1845_v49 = vsel %vm1830_vm3, %v1811_v33, %v1828_v61  ;;  %v1846_v13 = vsel %vm1830_vm3, %v1812_v47, %v1829_v36 }
 0x5cd   : > { %v1878_v18 = vsel %vm1847_vm4, %v1862_v3, %v1845_v49  ;;  %v1879_v14 = vsel %vm1847_vm4, %v1863_v41, %v1846_v13 }
 0x5ce   : > { %v2149_v57 = vpack.c.bf16 %v1879_v14, %v1878_v18 }
 0x5d0   : > { %2157 = vst [vmem:[%s3522_s28 + $0x38] sm:$0xff] %v2149_v57  }
 0x5d1   : > { %2484 = shalt.err (!%p2481_p3)
}
 0x5d2   : > { %s2485_s24 = scalar_lea.hbm %s3640_s18, 1024  ;;  %s2489_s27 = scalar_lea.hbm %s3696_s8, 2048 }
 0x5d3   : > { %p2486_p4 = scmp.ne.s32.totalorder %s3640_s18, %s2485_s24  ;;  %p2490_p9 = scmp.lt.u32.totalorder %s3640_s18, %s3696_s8 }
 0x5d4   : > { %p2491_p10 = scmp.lt.u32.totalorder %s2489_s27, %s2485_s24  ;;  %p2493_p12 = scmp.lt.u32.totalorder %s2485_s24, %s3640_s18 }
 0x5d5   : > { %p2487_p7 = pnand %p2486_p4, %p2624_p5 }
 0x5d6   : > { %p2492_p11 = por %p2491_p10, %p2490_p9 }
 0x5d7   : > { %p2488_p8 = pneg %p2487_p7 }
 0x5d8   : > { %p2494_p13 = por %p2493_p12, %p2492_p11 }
 0x5da   : > { %p2495_p0 = pnand %p2494_p13, %p2488_p8 }
 0x5dc   : > { %2498 = shalt.err (!%p2495_p0)
}
 0x5dd   : > { %s2536_s0 = smov 64   ;;  %s2537_s13 = smov 4  }
 0x5de   : > { %2284 = dma.vmem_to_hbm [thread:$0]  (%p2624_p5), %s3642_s14, 1024, %s3640_s18, %s3647_s19, %s2536_s0, %s2536_s0, %s2537_s13  }
 0x5df PF: > { %p2290_p1 = scmp.ge.s32.totalorder %s2533_s10, 2  ;;  %s1989_s20 = sand.u32 1, %s2521_s29  }
 0x5e0   : > { %s1990_s21 = scalar_lea.sflag [#allocation5], %s1989_s20 }
 0x5e1   : > { %p2287_p2 = pnand %p2290_p1, %p2628_p6 }
 0x5e3   : > { %2516 = dma.done.wait (!%p2287_p2), %s1990_s21, 1024  }
 0x5e4   : > { %2518 = vsyncadd (!%p2287_p2), %s1990_s21, 4294966272  ;;  %p19_p3 = scmp.ge.s32.totalorder %s2611_s12, 4   ;;  %s3777_s29 = smov %s2525_s30 }
 0x5e5   : > { %s3778_s30 = smov %s2529_s9  ;;  %s3779_s9 = smov %s2622_s15 }
 0x5e6   : > { %s3780_s10 = smov %s2611_s12  ;;  %21 = sbr.rel (!%p19_p3) target bundleno = 5 (0x5), region = 83 }
 0x5ed   :  { %1995 = vsyncpa [#allocation5], 1 }
 0x5ee   :  { %1997 = vsyncpa [#allocation5 + $0x1], 1 }

</bundles_post_ra>
